<compile_context>
chip_gen: v7x
topology: tpu7x:2x2x1
jax: 0.10.0
libtpu: 0.0.40
codegen_flags: <defaults>
</compile_context>

<pallas_src>
import jax
import jax.numpy as jnp
from jax import lax
from jax.experimental import pallas as pl
from jax.experimental.pallas import tpu as pltpu


def net5_kernel(x_ref,
                w1_ref, b1_ref, w2_ref, b2_ref, w3_ref, b3_ref,
                w4_ref, b4_ref, w5_ref, b5_ref, w6_ref, b6_ref,
                o_ref):
    """Fused 6-layer MLP on one batch tile; all weights are VMEM-resident."""
    # TODO(synk): training-mode dropout RNG cannot match torch bit-for-bit; left as identity (eval).
    h = x_ref[...].astype(jnp.bfloat16)  # in-kernel cast: no wrapper-side astype/pad of x

    def hidden(h, w_ref, b_ref):
        # bf16 x bf16 -> f32 MXU accumulate, f32 bias add, ReLU, one downcast.
        acc = jnp.dot(h, w_ref[...], preferred_element_type=jnp.float32) + b_ref[...]
        return jnp.maximum(acc, 0.0).astype(jnp.bfloat16)

    h = hidden(h, w1_ref, b1_ref)
    h = hidden(h, w2_ref, b2_ref)
    h = hidden(h, w3_ref, b3_ref)
    h = hidden(h, w4_ref, b4_ref)
    h = hidden(h, w5_ref, b5_ref)

    # Head: contract (1, n5) with (tb, n5) over n5 -> (1, tb).  Batch lands on the
    # lane axis, so the writeback is lane-dense and every stored byte is useful
    # (vs. the old 128-lane padded f32 slab).
    out = lax.dot_general(
        w6_ref[...], h,
        dimension_numbers=(((1,), (1,)), ((), ())),
        preferred_element_type=jnp.float32) + b6_ref[...]
    o_ref[...] = out.astype(o_ref.dtype)


def _round_up(x, m):
    return (x + m - 1) // m * m


def _device_kind():
    try:
        return jax.devices()[0].device_kind.lower()
    except Exception:
        return ""


def _pick_batch_tiling(B, max_tile=1024):
    """Choose (tile, num_tiles, padded_B) for the batch grid, chip-aware."""
    b16 = _round_up(max(B, 16), 16)          # bf16 sublane packing: 16-row multiples
    kind = _device_kind()
    two_tensorcores = ("v7" in kind) or ("7x" in kind)
    if two_tensorcores and b16 >= 256:
        # v7x: exactly 2 grid steps so both TensorCores get a tile.
        tb = _round_up(pl.cdiv(b16, 2), 128)
    else:
        # v5e / v6e: single TensorCore -> one grid step for typical B.
        tb = min(b16, max_tile)
    n_tiles = pl.cdiv(b16, tb)
    if n_tiles > 1:
        tb = _round_up(tb, 128)              # lane-dense output store across tiles
        n_tiles = pl.cdiv(b16, tb)
    return tb, n_tiles, tb * n_tiles


def _mlp_math(x, params):
    """Pure-JAX forward with the same dtype policy as the kernel (bf16 ops, f32 acc).

    Used both as the tiny-batch fast path and as the test reference."""
    h = x.astype(jnp.bfloat16)
    n = len(params)
    for i, (w, b) in enumerate(params):
        acc = jnp.dot(h, jnp.asarray(w).astype(jnp.bfloat16),
                      preferred_element_type=jnp.float32)
        acc = acc + jnp.asarray(b, jnp.float32).reshape(1, -1)
        h = jnp.maximum(acc, 0.0).astype(jnp.bfloat16) if i < n - 1 else acc
    return h


def net5_forward(x, params, *, out_dtype=jnp.float32, max_tile=1024,
                 small_batch_threshold=64, force_pallas=False):
    """x: [B, input_dim] f32.  params: list of (W [in, out], b [1, out]) f32 (torch W.T)."""
    B, input_dim = x.shape
    n_layers = len(params)

    # Tiny-batch fast path: pallas launch / pipeline setup dominates there.
    if B <= small_batch_threshold and not force_pallas:
        return _mlp_math(x, params).astype(out_dtype)

    tb, n_tiles, b_pad = _pick_batch_tiling(B, max_tile=max_tile)

    x_in = x
    if b_pad != B:  # only pads when B is not tile-aligned (never for aligned batches)
        x_in = jnp.pad(x, ((0, b_pad - B), (0, 0)))

    flat = []
    in_specs = [pl.BlockSpec((tb, input_dim), lambda i: (i, 0))]   # x: tiled over batch
    for li, (w, b) in enumerate(params):
        b = jnp.asarray(b, jnp.float32).reshape(1, -1)
        if li == n_layers - 1:
            # Head weights in (1, n5) row layout for the batch-on-lanes contraction.
            w = jnp.asarray(w, jnp.float32).T.astype(jnp.bfloat16)
        else:
            w = jnp.asarray(w).astype(jnp.bfloat16)
        flat.extend([w, b])
        # Full-array blocks pinned to (0, 0): weights/biases stay VMEM-resident
        # across all batch tiles.
        in_specs.append(pl.BlockSpec(w.shape, lambda i: (0, 0)))
        in_specs.append(pl.BlockSpec(b.shape, lambda i: (0, 0)))

    per_row_flops = sum(2 * int(w.shape[0]) * int(w.shape[1]) for w, _ in params)
    bytes_accessed = (int(x_in.size) * x_in.dtype.itemsize
                      + sum(int(a.size) * a.dtype.itemsize for a in flat)
                      + b_pad * jnp.dtype(out_dtype).itemsize)

    out = pl.pallas_call(
        net5_kernel,
        out_shape=jax.ShapeDtypeStruct((1, b_pad), out_dtype),
        grid_spec=pltpu.PrefetchScalarGridSpec(
            num_scalar_prefetch=0,
            grid=(n_tiles,),
            in_specs=in_specs,
            # Each grid step writes its tb results as one lane-dense row segment.
            out_specs=pl.BlockSpec((1, tb), lambda i: (0, i)),
        ),
        compiler_params=pltpu.CompilerParams(
            # Batch tiles are independent -> shard across v7x's two TensorCores.
            dimension_semantics=("parallel",),
        ),
        cost_estimate=pl.CostEstimate(
            flops=b_pad * per_row_flops,
            transcendentals=0,
            bytes_accessed=bytes_accessed),
    )(x_in, *flat)

    # (1, b_pad) row of results -> (B, 1) column (padded garbage rows sliced away).
    return out.reshape(-1)[:B].reshape(B, 1).astype(out_dtype)


def init_linear(key, fan_in, fan_out):
    # PyTorch nn.Linear default init: U(-1/sqrt(fan_in), 1/sqrt(fan_in)); W stored as [in, out].
    kw, kb = jax.random.split(key)
    bound = 1.0 / jnp.sqrt(jnp.float32(fan_in))
    w = jax.random.uniform(kw, (fan_in, fan_out), jnp.float32, -bound, bound)
    b = jax.random.uniform(kb, (1, fan_out), jnp.float32, -bound, bound)
    return w, b


if __name__ == "__main__":
    input_dim, n1, n2, n3, n4, n5 = 32, 64, 64, 32, 32, 16

    key = jax.random.PRNGKey(0)
    keys = jax.random.split(key, 9)
    dims = [(input_dim, n1), (n1, n2), (n2, n3), (n3, n4), (n4, n5), (n5, 1)]
    params = [init_linear(k, fi, fo) for k, (fi, fo) in zip(keys[:6], dims)]

    # 1) Batched case through the Pallas kernel: single 256-row tile on v5e/v6e,
    #    two 128-row tiles across the TensorCores on v7x.
    B = 256
    x = jax.random.normal(keys[6], (B, input_dim), jnp.float32)
    out = jax.block_until_ready(net5_forward(x, params))
    ref = _mlp_math(x, params)
    assert out.shape == (B, 1), out.shape
    err = float(jnp.max(jnp.abs(out - ref)))
    assert jnp.allclose(out, ref, atol=2e-3, rtol=2e-3), ("batched mismatch", err)

    # 2) Ragged batch forced through the kernel: exercises the pad-to-tile path
    #    (padded rows produce garbage and are sliced away).
    B_r = 40
    x_r = jax.random.normal(keys[7], (B_r, input_dim), jnp.float32)
    out_r = jax.block_until_ready(net5_forward(x_r, params, force_pallas=True))
    ref_r = _mlp_math(x_r, params)
    assert out_r.shape == (B_r, 1), out_r.shape
    err_r = float(jnp.max(jnp.abs(out_r - ref_r)))
    assert jnp.allclose(out_r, ref_r, atol=2e-3, rtol=2e-3), ("ragged mismatch", err_r)

    # 3) Tiny batch takes the non-Pallas fast path (launch overhead dominates there).
    B_s = 8
    x_s = jax.random.normal(keys[8], (B_s, input_dim), jnp.float32)
    out_s = jax.block_until_ready(net5_forward(x_s, params))
    assert out_s.shape == (B_s, 1), out_s.shape
    assert jnp.allclose(out_s, _mlp_math(x_s, params), atol=2e-3, rtol=2e-3)

    print("KERNEL_OK")
</pallas_src>

<mosaic_0001>
module attributes {stable_mosaic.version = 11 : i64} {
  func.func @net5_kernel(%arg0: i32, %arg1: memref<256x32xf32, #tpu.memory_space<vmem>>, %arg2: memref<32x64xbf16, #tpu.memory_space<vmem>>, %arg3: memref<1x64xf32, #tpu.memory_space<vmem>>, %arg4: memref<64x64xbf16, #tpu.memory_space<vmem>>, %arg5: memref<1x64xf32, #tpu.memory_space<vmem>>, %arg6: memref<64x32xbf16, #tpu.memory_space<vmem>>, %arg7: memref<1x32xf32, #tpu.memory_space<vmem>>, %arg8: memref<32x32xbf16, #tpu.memory_space<vmem>>, %arg9: memref<1x32xf32, #tpu.memory_space<vmem>>, %arg10: memref<32x16xbf16, #tpu.memory_space<vmem>>, %arg11: memref<1x16xf32, #tpu.memory_space<vmem>>, %arg12: memref<1x16xbf16, #tpu.memory_space<vmem>>, %arg13: memref<1x1xf32, #tpu.memory_space<vmem>>, %arg14: memref<1x256xf32, #tpu.memory_space<vmem>>) attributes {dimension_semantics = [#tpu.dimension_semantics<parallel>], iteration_bounds = array<i64: 1>, scalar_prefetch = 0 : i64, scratch_operands = 0 : i64, tpu.core_type = #tpu.core_type<tc>, window_params = [{transform_indices = @transform_0, window_bounds = array<i64: 256, 32>}, {pipeline_mode = #tpu.pipeline_mode<synchronous>, transform_indices = @transform_1, window_bounds = array<i64: 32, 64>}, {pipeline_mode = #tpu.pipeline_mode<synchronous>, transform_indices = @transform_2, window_bounds = array<i64: 1, 64>}, {pipeline_mode = #tpu.pipeline_mode<synchronous>, transform_indices = @transform_3, window_bounds = array<i64: 64, 64>}, {pipeline_mode = #tpu.pipeline_mode<synchronous>, transform_indices = @transform_4, window_bounds = array<i64: 1, 64>}, {pipeline_mode = #tpu.pipeline_mode<synchronous>, transform_indices = @transform_5, window_bounds = array<i64: 64, 32>}, {pipeline_mode = #tpu.pipeline_mode<synchronous>, transform_indices = @transform_6, window_bounds = array<i64: 1, 32>}, {pipeline_mode = #tpu.pipeline_mode<synchronous>, transform_indices = @transform_7, window_bounds = array<i64: 32, 32>}, {pipeline_mode = #tpu.pipeline_mode<synchronous>, transform_indices = @transform_8, window_bounds = array<i64: 1, 32>}, {pipeline_mode = #tpu.pipeline_mode<synchronous>, transform_indices = @transform_9, window_bounds = array<i64: 32, 16>}, {pipeline_mode = #tpu.pipeline_mode<synchronous>, transform_indices = @transform_10, window_bounds = array<i64: 1, 16>}, {pipeline_mode = #tpu.pipeline_mode<synchronous>, transform_indices = @transform_11, window_bounds = array<i64: 1, 16>}, {pipeline_mode = #tpu.pipeline_mode<synchronous>, transform_indices = @transform_12, window_bounds = array<i64: 1, 1>}, {transform_indices = @transform_13, window_bounds = array<i64: 1, 256>}]} {
    %c0 = arith.constant 0 : index
    %c0_0 = arith.constant 0 : index
    %0 = vector.load %arg1[%c0, %c0_0] : memref<256x32xf32, #tpu.memory_space<vmem>>, vector<256x32xf32>
    %1 = arith.truncf %0 : vector<256x32xf32> to vector<256x32xbf16>
    %c0_1 = arith.constant 0 : index
    %c0_2 = arith.constant 0 : index
    %2 = vector.load %arg2[%c0_1, %c0_2] : memref<32x64xbf16, #tpu.memory_space<vmem>>, vector<32x64xbf16>
    %cst = arith.constant dense<0.000000e+00> : vector<256x64xf32>
    %3 = tpu.matmul %1, %2, %cst {dimension_numbers = #tpu.dot_dimension_numbers<[1], [0], [0], [1], [0, 0, 1, 1], [], []>} : vector<256x32xbf16>, vector<32x64xbf16>, vector<256x64xf32> -> vector<256x64xf32>
    %c0_3 = arith.constant 0 : index
    %c0_4 = arith.constant 0 : index
    %4 = vector.load %arg3[%c0_3, %c0_4] : memref<1x64xf32, #tpu.memory_space<vmem>>, vector<1x64xf32>
    %5 = vector.broadcast %4 : vector<1x64xf32> to vector<256x64xf32>
    %6 = arith.addf %3, %5 : vector<256x64xf32>
    %cst_5 = arith.constant 0.000000e+00 : f32
    %7 = vector.broadcast %cst_5 : f32 to vector<256x64xf32>
    %8 = arith.maximumf %6, %7 : vector<256x64xf32>
    %9 = arith.truncf %8 : vector<256x64xf32> to vector<256x64xbf16>
    %c0_6 = arith.constant 0 : index
    %c0_7 = arith.constant 0 : index
    %10 = vector.load %arg4[%c0_6, %c0_7] : memref<64x64xbf16, #tpu.memory_space<vmem>>, vector<64x64xbf16>
    %cst_8 = arith.constant dense<0.000000e+00> : vector<256x64xf32>
    %11 = tpu.matmul %9, %10, %cst_8 {dimension_numbers = #tpu.dot_dimension_numbers<[1], [0], [0], [1], [0, 0, 1, 1], [], []>} : vector<256x64xbf16>, vector<64x64xbf16>, vector<256x64xf32> -> vector<256x64xf32>
    %c0_9 = arith.constant 0 : index
    %c0_10 = arith.constant 0 : index
    %12 = vector.load %arg5[%c0_9, %c0_10] : memref<1x64xf32, #tpu.memory_space<vmem>>, vector<1x64xf32>
    %13 = vector.broadcast %12 : vector<1x64xf32> to vector<256x64xf32>
    %14 = arith.addf %11, %13 : vector<256x64xf32>
    %cst_11 = arith.constant 0.000000e+00 : f32
    %15 = vector.broadcast %cst_11 : f32 to vector<256x64xf32>
    %16 = arith.maximumf %14, %15 : vector<256x64xf32>
    %17 = arith.truncf %16 : vector<256x64xf32> to vector<256x64xbf16>
    %c0_12 = arith.constant 0 : index
    %c0_13 = arith.constant 0 : index
    %18 = vector.load %arg6[%c0_12, %c0_13] : memref<64x32xbf16, #tpu.memory_space<vmem>>, vector<64x32xbf16>
    %cst_14 = arith.constant dense<0.000000e+00> : vector<256x32xf32>
    %19 = tpu.matmul %17, %18, %cst_14 {dimension_numbers = #tpu.dot_dimension_numbers<[1], [0], [0], [1], [0, 0, 1, 1], [], []>} : vector<256x64xbf16>, vector<64x32xbf16>, vector<256x32xf32> -> vector<256x32xf32>
    %c0_15 = arith.constant 0 : index
    %c0_16 = arith.constant 0 : index
    %20 = vector.load %arg7[%c0_15, %c0_16] : memref<1x32xf32, #tpu.memory_space<vmem>>, vector<1x32xf32>
    %21 = vector.broadcast %20 : vector<1x32xf32> to vector<256x32xf32>
    %22 = arith.addf %19, %21 : vector<256x32xf32>
    %cst_17 = arith.constant 0.000000e+00 : f32
    %23 = vector.broadcast %cst_17 : f32 to vector<256x32xf32>
    %24 = arith.maximumf %22, %23 : vector<256x32xf32>
    %25 = arith.truncf %24 : vector<256x32xf32> to vector<256x32xbf16>
    %c0_18 = arith.constant 0 : index
    %c0_19 = arith.constant 0 : index
    %26 = vector.load %arg8[%c0_18, %c0_19] : memref<32x32xbf16, #tpu.memory_space<vmem>>, vector<32x32xbf16>
    %cst_20 = arith.constant dense<0.000000e+00> : vector<256x32xf32>
    %27 = tpu.matmul %25, %26, %cst_20 {dimension_numbers = #tpu.dot_dimension_numbers<[1], [0], [0], [1], [0, 0, 1, 1], [], []>} : vector<256x32xbf16>, vector<32x32xbf16>, vector<256x32xf32> -> vector<256x32xf32>
    %c0_21 = arith.constant 0 : index
    %c0_22 = arith.constant 0 : index
    %28 = vector.load %arg9[%c0_21, %c0_22] : memref<1x32xf32, #tpu.memory_space<vmem>>, vector<1x32xf32>
    %29 = vector.broadcast %28 : vector<1x32xf32> to vector<256x32xf32>
    %30 = arith.addf %27, %29 : vector<256x32xf32>
    %cst_23 = arith.constant 0.000000e+00 : f32
    %31 = vector.broadcast %cst_23 : f32 to vector<256x32xf32>
    %32 = arith.maximumf %30, %31 : vector<256x32xf32>
    %33 = arith.truncf %32 : vector<256x32xf32> to vector<256x32xbf16>
    %c0_24 = arith.constant 0 : index
    %c0_25 = arith.constant 0 : index
    %34 = vector.load %arg10[%c0_24, %c0_25] : memref<32x16xbf16, #tpu.memory_space<vmem>>, vector<32x16xbf16>
    %cst_26 = arith.constant dense<0.000000e+00> : vector<256x16xf32>
    %35 = tpu.matmul %33, %34, %cst_26 {dimension_numbers = #tpu.dot_dimension_numbers<[1], [0], [0], [1], [0, 0, 1, 1], [], []>} : vector<256x32xbf16>, vector<32x16xbf16>, vector<256x16xf32> -> vector<256x16xf32>
    %c0_27 = arith.constant 0 : index
    %c0_28 = arith.constant 0 : index
    %36 = vector.load %arg11[%c0_27, %c0_28] : memref<1x16xf32, #tpu.memory_space<vmem>>, vector<1x16xf32>
    %37 = vector.broadcast %36 : vector<1x16xf32> to vector<256x16xf32>
    %38 = arith.addf %35, %37 : vector<256x16xf32>
    %cst_29 = arith.constant 0.000000e+00 : f32
    %39 = vector.broadcast %cst_29 : f32 to vector<256x16xf32>
    %40 = arith.maximumf %38, %39 : vector<256x16xf32>
    %41 = arith.truncf %40 : vector<256x16xf32> to vector<256x16xbf16>
    %c0_30 = arith.constant 0 : index
    %c0_31 = arith.constant 0 : index
    %42 = vector.load %arg12[%c0_30, %c0_31] : memref<1x16xbf16, #tpu.memory_space<vmem>>, vector<1x16xbf16>
    %cst_32 = arith.constant dense<0.000000e+00> : vector<1x256xf32>
    %43 = tpu.matmul %42, %41, %cst_32 {dimension_numbers = #tpu.dot_dimension_numbers<[1], [1], [0], [0], [0, 0, 1, 0], [], []>} : vector<1x16xbf16>, vector<256x16xbf16>, vector<1x256xf32> -> vector<1x256xf32>
    %c0_33 = arith.constant 0 : index
    %c0_34 = arith.constant 0 : index
    %44 = vector.load %arg13[%c0_33, %c0_34] : memref<1x1xf32, #tpu.memory_space<vmem>>, vector<1x1xf32>
    %45 = vector.broadcast %44 : vector<1x1xf32> to vector<1x256xf32>
    %46 = arith.addf %43, %45 : vector<1x256xf32>
    %c0_35 = arith.constant 0 : index
    %c0_36 = arith.constant 0 : index
    %47 = vector.load %arg14[%c0_35, %c0_36] : memref<1x256xf32, #tpu.memory_space<vmem>>, vector<1x256xf32>
    tpu.vector_store %arg14[%c0_35, %c0_36], %46 {strides = array<i32>} : memref<1x256xf32, #tpu.memory_space<vmem>>, vector<1x256xf32>,
    return
  }
  func.func @transform_0(%arg0: i32) -> (i32, i32) {
    %c0_i32 = arith.constant 0 : i32
    %c0_i32_0 = arith.constant 0 : i32
    return %arg0, %c0_i32 : i32, i32
  }
  func.func @transform_1(%arg0: i32) -> (i32, i32) {
    %c0_i32 = arith.constant 0 : i32
    %c0_i32_0 = arith.constant 0 : i32
    %c0_i32_1 = arith.constant 0 : i32
    return %c0_i32, %c0_i32_0 : i32, i32
  }
  func.func @transform_2(%arg0: i32) -> (i32, i32) {
    %c0_i32 = arith.constant 0 : i32
    %c0_i32_0 = arith.constant 0 : i32
    %c0_i32_1 = arith.constant 0 : i32
    return %c0_i32, %c0_i32_0 : i32, i32
  }
  func.func @transform_3(%arg0: i32) -> (i32, i32) {
    %c0_i32 = arith.constant 0 : i32
    %c0_i32_0 = arith.constant 0 : i32
    %c0_i32_1 = arith.constant 0 : i32
    return %c0_i32, %c0_i32_0 : i32, i32
  }
  func.func @transform_4(%arg0: i32) -> (i32, i32) {
    %c0_i32 = arith.constant 0 : i32
    %c0_i32_0 = arith.constant 0 : i32
    %c0_i32_1 = arith.constant 0 : i32
    return %c0_i32, %c0_i32_0 : i32, i32
  }
  func.func @transform_5(%arg0: i32) -> (i32, i32) {
    %c0_i32 = arith.constant 0 : i32
    %c0_i32_0 = arith.constant 0 : i32
    %c0_i32_1 = arith.constant 0 : i32
    return %c0_i32, %c0_i32_0 : i32, i32
  }
  func.func @transform_6(%arg0: i32) -> (i32, i32) {
    %c0_i32 = arith.constant 0 : i32
    %c0_i32_0 = arith.constant 0 : i32
    %c0_i32_1 = arith.constant 0 : i32
    return %c0_i32, %c0_i32_0 : i32, i32
  }
  func.func @transform_7(%arg0: i32) -> (i32, i32) {
    %c0_i32 = arith.constant 0 : i32
    %c0_i32_0 = arith.constant 0 : i32
    %c0_i32_1 = arith.constant 0 : i32
    return %c0_i32, %c0_i32_0 : i32, i32
  }
  func.func @transform_8(%arg0: i32) -> (i32, i32) {
    %c0_i32 = arith.constant 0 : i32
    %c0_i32_0 = arith.constant 0 : i32
    %c0_i32_1 = arith.constant 0 : i32
    return %c0_i32, %c0_i32_0 : i32, i32
  }
  func.func @transform_9(%arg0: i32) -> (i32, i32) {
    %c0_i32 = arith.constant 0 : i32
    %c0_i32_0 = arith.constant 0 : i32
    %c0_i32_1 = arith.constant 0 : i32
    return %c0_i32, %c0_i32_0 : i32, i32
  }
  func.func @transform_10(%arg0: i32) -> (i32, i32) {
    %c0_i32 = arith.constant 0 : i32
    %c0_i32_0 = arith.constant 0 : i32
    %c0_i32_1 = arith.constant 0 : i32
    return %c0_i32, %c0_i32_0 : i32, i32
  }
  func.func @transform_11(%arg0: i32) -> (i32, i32) {
    %c0_i32 = arith.constant 0 : i32
    %c0_i32_0 = arith.constant 0 : i32
    %c0_i32_1 = arith.constant 0 : i32
    return %c0_i32, %c0_i32_0 : i32, i32
  }
  func.func @transform_12(%arg0: i32) -> (i32, i32) {
    %c0_i32 = arith.constant 0 : i32
    %c0_i32_0 = arith.constant 0 : i32
    %c0_i32_1 = arith.constant 0 : i32
    return %c0_i32, %c0_i32_0 : i32, i32
  }
  func.func @transform_13(%arg0: i32) -> (i32, i32) {
    %c0_i32 = arith.constant 0 : i32
    %c0_i32_0 = arith.constant 0 : i32
    return %c0_i32, %arg0 : i32, i32
  }
}

</mosaic_0001>

<bundles_post_ra>
// kernel: tpu_custom_call.1
= control target key start
LH: loop header
LB: loop body
LE: loop exit
PB: predicated region body
PF: predicated region fallthrough
CT: control target
= control target key end

     0   :  { %s2674_s0 = inlined_call_operand.vmem [shape: f32[256,32], index: 0, kind: input, shape index: {}]   ;;  %s2675_s1 = inlined_call_operand.vmem [shape: bf16[32,64], index: 1, kind: input, shape index: {}]   ;;  %s2676_s2 = inlined_call_operand.vmem [shape: f32[1,64], index: 2, kind: input, shape index: {}]   ;;  %s2677_s3 = inlined_call_operand.vmem [shape: bf16[64,64], index: 3, kind: input, shape index: {}]   ;;  %s2678_s4 = inlined_call_operand.vmem [shape: f32[1,64], index: 4, kind: input, shape index: {}]   ;;  %s2679_s5 = inlined_call_operand.vmem [shape: bf16[64,32], index: 5, kind: input, shape index: {}]   ;;  %s2680_s6 = inlined_call_operand.vmem [shape: f32[1,32], index: 6, kind: input, shape index: {}]   ;;  %s2681_s7 = inlined_call_operand.vmem [shape: bf16[32,32], index: 7, kind: input, shape index: {}]   ;;  %s2682_s8 = inlined_call_operand.vmem [shape: f32[1,32], index: 8, kind: input, shape index: {}]   ;;  %s2683_s9 = inlined_call_operand.vmem [shape: bf16[32,16], index: 9, kind: input, shape index: {}]   ;;  %s2684_s10 = inlined_call_operand.vmem [shape: f32[1,16], index: 10, kind: input, shape index: {}]   ;;  %s2685_s11 = inlined_call_operand.vmem [shape: bf16[1,16], index: 11, kind: input, shape index: {}]   ;;  %s2686_s12 = inlined_call_operand.<no memory space> [shape: f32[1,1], index: 12, kind: input, shape index: {}]   ;;  %s2687_s13 = inlined_call_operand.hbm [shape: f32[1,256], index: 13, kind: output, shape index: {}]  }
   0x1   :  { %v18_v0 = vstv %s2686_s12 }
   0x2   :  { %19 = vst [vmem:[#allocation2] sm:$0x1] %v18_v0 }
   0x3   :  { %v2087_v1 = vld [vmem:[%s2675_s1] sm:$0xff]   ;;  %v2088_v2 = vld [vmem:[%s2675_s1 + $0x8] sm:$0xff]   ;;  %vm119_vm0 = vcmask 261120   ;;  %v50_v6 = vld [vmem:[%s2674_s0 + $0x10] sm:$0xff] }
   0x4   :  { %1883 = vmatprep.subr.bf16.mxu0 %v2087_v1  ;;  %v48_v3 = vld [vmem:[%s2674_s0] sm:$0xff]  ;;  %v49_v4 = vld [vmem:[%s2674_s0 + $0x8] sm:$0xff]  ;;  %2071 = vmatprep.subr.bf16.mxu1 %v2087_v1  ;;  %v51_v7 = vld [vmem:[%s2674_s0 + $0x18] sm:$0xff] }
   0x5   :  { %1884 = vmatpush3.bf16.msra.mxu0 %v2087_v1  ;;  %v80_v5 = vpack.c.bf16 %v49_v4, %v48_v3  ;;  %2073 = vmatpush3.bf16.msra.mxu1 %v2087_v1  ;;  %v52_v8 = vld [vmem:[%s2674_s0 + $0x20] sm:$0xff]  ;;  %v53_v9 = vld [vmem:[%s2674_s0 + $0x28] sm:$0xff]  ;;  %v81_v10 = vpack.c.bf16 %v51_v7, %v50_v6  ;;  %v70_v14 = vld [vmem:[%s2674_s0 + $0xb0] sm:$0xff] }
   0x6   :  { %1885 = vmatprep.subr.bf16.mxu0 %v2088_v2  ;;  %2072 = vmatprep.subr.bf16.mxu1 %v2088_v2  ;;  %v82_v11 = vpack.c.bf16 %v53_v9, %v52_v8  ;;  %v68_v12 = vld [vmem:[%s2674_s0 + $0xa0] sm:$0xff]  ;;  %v69_v13 = vld [vmem:[%s2674_s0 + $0xa8] sm:$0xff]  ;;  %v71_v15 = vld [vmem:[%s2674_s0 + $0xb8] sm:$0xff] }
   0x7   :  { %1887 = vmatprep.mubr.msk.bf16.mxu0 %vm119_vm0, %v80_v5  ;;  %v54_v16 = vld [vmem:[%s2674_s0 + $0x30] sm:$0xff]  ;;  %v90_v17 = vpack.c.bf16 %v69_v13, %v68_v12  ;;  %v91_v18 = vpack.c.bf16 %v71_v15, %v70_v14  ;;  %v72_v19 = vld [vmem:[%s2674_s0 + $0xc0] sm:$0xff]  ;;  %v73_v20 = vld [vmem:[%s2674_s0 + $0xc8] sm:$0xff] }
   0x8   :  { %v55_v21 = vld [vmem:[%s2674_s0 + $0x38] sm:$0xff]  ;;  %v56_v22 = vld [vmem:[%s2674_s0 + $0x40] sm:$0xff]  ;;  %v57_v23 = vld [vmem:[%s2674_s0 + $0x48] sm:$0xff]  ;;  %v92_v24 = vpack.c.bf16 %v73_v20, %v72_v19 }
   0x9   :  { %1886 = vmatpush3.bf16.msra.mxu0 %v2088_v2  ;;  %2074 = vmatpush3.bf16.msra.mxu1 %v2088_v2  ;;  %v74_v25 = vld [vmem:[%s2674_s0 + $0xd0] sm:$0xff]  ;;  %v75_v26 = vld [vmem:[%s2674_s0 + $0xd8] sm:$0xff]  ;;  %v76_v27 = vld [vmem:[%s2674_s0 + $0xe0] sm:$0xff]  ;;  %v83_v30 = vpack.c.bf16 %v55_v21, %v54_v16  ;;  %v84_v32 = vpack.c.bf16 %v57_v23, %v56_v22 }
   0xa   :  { %1907 = vmatprep.mubr.msk.bf16.mxu1 %vm119_vm0, %v90_v17  ;;  %v77_v28 = vld [vmem:[%s2674_s0 + $0xe8] sm:$0xff]  ;;  %v2089_v29 = vld [vmem:[%s2677_s3] sm:$0xff]   ;;  %v2091_v33 = vld [vmem:[%s2677_s3 + $0x10] sm:$0xff]   ;;  %v93_v36 = vpack.c.bf16 %v75_v26, %v74_v25 }
   0xb   :  { %v2090_v31 = vld [vmem:[%s2677_s3 + $0x8] sm:$0xff]   ;;  %1919 = vmatprep.subr.bf16.mxu1 %v2089_v29  ;;  %v58_v34 = vld [vmem:[%s2674_s0 + $0x50] sm:$0xff]  ;;  %v59_v35 = vld [vmem:[%s2674_s0 + $0x58] sm:$0xff]  ;;  %v94_v39 = vpack.c.bf16 %v77_v28, %v76_v27 }
   0xc   :  { %1888 = vmatmul.mubr.msk.bf16.vlgmr.msra.gmra.mrb[0].mxu0 %vm119_vm0, %v81_v10  ;;  %1908 = vmatmul.mubr.msk.bf16.vlgmr.msra.gmra.mrb[0].mxu1 %vm119_vm0, %v91_v18  ;;  %v60_v37 = vld [vmem:[%s2674_s0 + $0x60] sm:$0xff]  ;;  %v61_v38 = vld [vmem:[%s2674_s0 + $0x68] sm:$0xff] }
   0xd   :  { %1891 = vmatprep.mubr.msk.bf16.mxu0 %vm119_vm0, %v82_v11  ;;  %1911 = vmatprep.mubr.msk.bf16.mxu1 %vm119_vm0, %v92_v24 }
   0xe   :  { %1920 = vmatpush3.bf16.msra.mxu1 %v2089_v29 }
   0xf   :  { %1921 = vmatprep.subr.bf16.mxu1 %v2090_v31 }
  0x12   :  { %1922 = vmatpush3.bf16.msra.mxu1 %v2090_v31 }
  0x13   :  { %1923 = vmatprep.subr.bf16.mxu1 %v2091_v33 }
  0x14   :  { %1892 = vmatmul.mubr.msk.bf16.gmra.mrb[4].mxu0 %vm119_vm0, %v83_v30  ;;  %1912 = vmatmul.mubr.msk.bf16.gmra.mrb[4].mxu1 %vm119_vm0, %v93_v36 }
  0x15   :  { %1895 = vmatprep.mubr.msk.bf16.mxu0 %vm119_vm0, %v84_v32 }
  0x16   :  { %20 = vsyncpa [#allocation4], 0  ;;  %v85_v40 = vpack.c.bf16 %v59_v35, %v58_v34  ;;  %1915 = vmatprep.mubr.msk.bf16.mxu1 %vm119_vm0, %v94_v39  ;;  %v78_v41 = vld [vmem:[%s2674_s0 + $0xf0] sm:$0xff]  ;;  %v79_v42 = vld [vmem:[%s2674_s0 + $0xf8] sm:$0xff]  ;;  %v86_v43 = vpack.c.bf16 %v61_v38, %v60_v37  ;;  %1924 = vmatpush3.bf16.msra.mxu1 %v2091_v33  ;;  %vm416_vm1 = vcmask 523264   ;;  %vm1541_vm2 = vcmask 130048  }
  0x17   :  { %v95_v44 = vpack.c.bf16 %v79_v42, %v78_v41  ;;  %v62_v45 = vld [vmem:[%s2674_s0 + $0x70] sm:$0xff]  ;;  %v63_v46 = vld [vmem:[%s2674_s0 + $0x78] sm:$0xff]  ;;  %v64_v47 = vld [vmem:[%s2674_s0 + $0x80] sm:$0xff] }
  0x18   :  { %v65_v48 = vld [vmem:[%s2674_s0 + $0x88] sm:$0xff]  ;;  %v87_v49 = vpack.c.bf16 %v63_v46, %v62_v45  ;;  %v66_v51 = vld [vmem:[%s2674_s0 + $0x90] sm:$0xff]  ;;  %v67_v52 = vld [vmem:[%s2674_s0 + $0x98] sm:$0xff] }
  0x19   :  { %v88_v50 = vpack.c.bf16 %v65_v48, %v64_v47  ;;  %v89_v53 = vpack.c.bf16 %v67_v52, %v66_v51  ;;  %v2092_v54 = vld [vmem:[%s2677_s3 + $0x18] sm:$0xff]   ;;  %v2093_v55 = vld [vmem:[%s2679_s5] sm:$0xff]   ;;  %v2094_v56 = vld [vmem:[%s2679_s5 + $0x8] sm:$0xff]  }
  0x1a   :  { %1925 = vmatprep.subr.bf16.mxu1 %v2092_v54  ;;  %1959 = vmatprep.subr.bf16.mxu0 %v2093_v55  ;;  %v2095_v57 = vld [vmem:[%s2679_s5 + $0x10] sm:$0xff]   ;;  %v2343_v58 = vld [vmem:[%s2676_s2] ss:$0 sm:$0xff] }
  0x1b   :  { %1926 = vmatpush3.bf16.msra.mxu1 %v2092_v54  ;;  %1960 = vmatpush3.bf16.msra.mxu0 %v2093_v55 }
  0x1c   :  { %1896 = vmatmul.mubr.msk.bf16.gmra.mrb[8].mxu0 %vm119_vm0, %v85_v40  ;;  %1916 = vmatmul.mubr.msk.bf16.gmra.mrb[8].mxu1 %vm119_vm0, %v95_v44 }
  0x1d   :  { %1899 = vmatprep.mubr.msk.bf16.mxu0 %vm119_vm0, %v86_v43  ;;  %1961 = vmatprep.subr.bf16.mxu0 %v2094_v56 }
  0x1f   :  { %1962 = vmatpush3.bf16.msra.mxu0 %v2094_v56 }
  0x20   :  { %1963 = vmatprep.subr.bf16.mxu0 %v2095_v57 }
  0x23   :  { %1964 = vmatpush3.bf16.msra.mxu0 %v2095_v57 }
  0x24   :  { %1900 = vmatmul.mubr.msk.bf16.gmra.mrb[12].mxu0 %vm119_vm0, %v87_v49 }
  0x25   :  { %1903 = vmatprep.mubr.msk.bf16.mxu0 %vm119_vm0, %v88_v50 }
  0x2c   :  { %1904 = vmatmul.mubr.msk.bf16.gmra.mrb[16].mxu0 %vm119_vm0, %v89_v53 }
  0xdf   :  { %v1889_v59 = vpop.f32.mrb[0].mxu0  ;;  %v1909_v2 = vpop.f32.mrb[0].mxu1 }
  0xe0   :  { %v211_v60 = vadd.f32 %v1889_v59, %v2343_v58  ;;  %v202_v61 = vpop.f32.mrb[1].mxu0  ;;  %v291_v4 = vadd.f32 %v1909_v2, %v2343_v58  ;;  %v282_v5 = vpop.f32.mrb[1].mxu1 }
  0xe1   :  { %v203_v62 = vadd.f32 %v2343_v58, %v202_v61  ;;  %v1890_v63 = vpop.f32.mrb[2].mxu0  ;;  %v283_v8 = vadd.f32 %v2343_v58, %v282_v5  ;;  %v1910_v9 = vpop.f32.mrb[2].mxu1 }
  0xe2   :  { %v214_v0 = vadd.f32 %v1890_v63, %v2343_v58  ;;  %v205_v1 = vpop.f32.mrb[3].mxu0  ;;  %v331_v6 = vmax.f32 %v211_v60, 0.0  ;;  %v351_v12 = vmax.f32 %v291_v4, 0.0  ;;  %v294_v13 = vadd.f32 %v1910_v9, %v2343_v58  ;;  %v285_v14 = vpop.f32.mrb[3].mxu1 }
  0xe3   :  { %v206_v3 = vadd.f32 %v2343_v58, %v205_v1  ;;  %v329_v10 = vmax.f32 %v203_v62, 0.0  ;;  %v349_v16 = vmax.f32 %v283_v8, 0.0  ;;  %v286_v17 = vadd.f32 %v2343_v58, %v285_v14 }
  0xe4   :  { %v332_v7 = vmax.f32 %v214_v0, 0.0  ;;  %v352_v20 = vmax.f32 %v294_v13, 0.0 }
  0xe5   :  { %v330_v11 = vmax.f32 %v206_v3, 0.0  ;;  %v350_v23 = vmax.f32 %v286_v17, 0.0 }
  0xe6   :  { %v362_v15 = vpack.c.bf16 %v332_v7, %v331_v6  ;;  %v2356_v26 = vpack.c.bf16 %v352_v20, %v351_v12 }
  0xe7   :  { %v361_v18 = vpack.c.bf16 %v330_v11, %v329_v10  ;;  %v1893_v19 = vpop.f32.mrb[4].mxu0  ;;  %v2360_v29 = vpack.c.bf16 %v350_v23, %v349_v16  ;;  %v1913_v30 = vpop.f32.mrb[4].mxu1 }
  0xe8   :  { %v227_v21 = vadd.f32 %v1893_v19, %v2343_v58  ;;  %v218_v22 = vpop.f32.mrb[5].mxu0  ;;  %v307_v32 = vadd.f32 %v1913_v30, %v2343_v58  ;;  %v298_v33 = vpop.f32.mrb[5].mxu1 }
  0xe9   :  { %v219_v24 = vadd.f32 %v2343_v58, %v218_v22  ;;  %v1894_v25 = vpop.f32.mrb[6].mxu0  ;;  %1927 = vmatprep.mubr.msk.bf16.mxu1 %vm416_vm1, %v361_v18  ;;  %v299_v36 = vadd.f32 %v2343_v58, %v298_v33  ;;  %v1914_v37 = vpop.f32.mrb[6].mxu1 }
  0xea   :  { %v230_v27 = vadd.f32 %v1894_v25, %v2343_v58  ;;  %v221_v28 = vpop.f32.mrb[7].mxu0  ;;  %1928 = vmatmul.mubr.msk.bf16.vlgmr.msra.gmra.mrb[12].mxu1 %vm416_vm1, %v362_v15  ;;  %v335_v34 = vmax.f32 %v227_v21, 0.0  ;;  %v355_v40 = vmax.f32 %v307_v32, 0.0  ;;  %v310_v41 = vadd.f32 %v1914_v37, %v2343_v58  ;;  %v301_v42 = vpop.f32.mrb[7].mxu1 }
  0xeb   :  { %v222_v31 = vadd.f32 %v2343_v58, %v221_v28  ;;  %v333_v38 = vmax.f32 %v219_v24, 0.0  ;;  %v353_v44 = vmax.f32 %v299_v36, 0.0  ;;  %v302_v45 = vadd.f32 %v2343_v58, %v301_v42 }
  0xec   :  { %v336_v35 = vmax.f32 %v230_v27, 0.0  ;;  %v356_v48 = vmax.f32 %v310_v41, 0.0 }
  0xed   :  { %v334_v39 = vmax.f32 %v222_v31, 0.0  ;;  %v354_v51 = vmax.f32 %v302_v45, 0.0 }
  0xee   :  { %v364_v43 = vpack.c.bf16 %v336_v35, %v335_v34  ;;  %v2370_v54 = vpack.c.bf16 %v356_v48, %v355_v40 }
  0xef   :  { %v363_v46 = vpack.c.bf16 %v334_v39, %v333_v38  ;;  %v1897_v47 = vpop.f32.mrb[8].mxu0  ;;  %v373_v57 = vpack.c.bf16 %v354_v51, %v353_v44  ;;  %v1917_v59 = vpop.f32.mrb[8].mxu1 }
  0xf0   :  { %v243_v49 = vadd.f32 %v1897_v47, %v2343_v58  ;;  %v234_v50 = vpop.f32.mrb[9].mxu0  ;;  %v323_v61 = vadd.f32 %v1917_v59, %v2343_v58  ;;  %v314_v62 = vpop.f32.mrb[9].mxu1 }
  0xf1   :  { %v235_v52 = vadd.f32 %v2343_v58, %v234_v50  ;;  %v1898_v53 = vpop.f32.mrb[10].mxu0  ;;  %1931 = vmatprep.mubr.msk.bf16.mxu1 %vm416_vm1, %v363_v46  ;;  %v315_v1 = vadd.f32 %v2343_v58, %v314_v62  ;;  %v1918_v2 = vpop.f32.mrb[10].mxu1  ;;  %v2414_v46 = vld [vmem:[%s2678_s4] ss:$0 sm:$0xff] }
  0xf2   :  { %v246_v55 = vadd.f32 %v1898_v53, %v2343_v58  ;;  %v237_v56 = vpop.f32.mrb[11].mxu0  ;;  %1932 = vmatmul.mubr.msk.bf16.gmra.mrb[16].mxu1 %vm416_vm1, %v364_v43  ;;  %v339_v63 = vmax.f32 %v243_v49, 0.0  ;;  %v359_v5 = vmax.f32 %v323_v61, 0.0  ;;  %v326_v6 = vadd.f32 %v1918_v2, %v2343_v58  ;;  %v317_v7 = vpop.f32.mrb[11].mxu1 }
  0xf3   :  { %v238_v60 = vadd.f32 %v2343_v58, %v237_v56  ;;  %v337_v3 = vmax.f32 %v235_v52, 0.0  ;;  %v357_v9 = vmax.f32 %v315_v1, 0.0  ;;  %v318_v10 = vadd.f32 %v2343_v58, %v317_v7 }
  0xf4   :  { %v340_v0 = vmax.f32 %v246_v55, 0.0  ;;  %v360_v13 = vmax.f32 %v326_v6, 0.0 }
  0xf5   :  { %v338_v4 = vmax.f32 %v238_v60, 0.0  ;;  %v358_v16 = vmax.f32 %v318_v10, 0.0 }
  0xf6   :  { %v366_v8 = vpack.c.bf16 %v340_v0, %v339_v63  ;;  %v376_v19 = vpack.c.bf16 %v360_v13, %v359_v5 }
  0xf7   :  { %v365_v11 = vpack.c.bf16 %v338_v4, %v337_v3  ;;  %v1901_v12 = vpop.f32.mrb[12].mxu0  ;;  %v375_v22 = vpack.c.bf16 %v358_v16, %v357_v9 }
  0xf8   :  { %v259_v14 = vadd.f32 %v1901_v12, %v2343_v58  ;;  %v250_v15 = vpop.f32.mrb[13].mxu0 }
  0xf9   :  { %v251_v17 = vadd.f32 %v2343_v58, %v250_v15  ;;  %v1902_v18 = vpop.f32.mrb[14].mxu0  ;;  %1935 = vmatprep.mubr.msk.bf16.mxu1 %vm416_vm1, %v365_v11 }
  0xfa   :  { %v262_v20 = vadd.f32 %v1902_v18, %v2343_v58  ;;  %v253_v21 = vpop.f32.mrb[15].mxu0  ;;  %1936 = vmatmul.mubr.msk.bf16.gmra.mrb[20].mxu1 %vm416_vm1, %v366_v8  ;;  %v343_v24 = vmax.f32 %v259_v14, 0.0 }
  0xfb   :  { %v254_v23 = vadd.f32 %v2343_v58, %v253_v21  ;;  %v341_v27 = vmax.f32 %v251_v17, 0.0 }
  0xfc   :  { %v344_v25 = vmax.f32 %v262_v20, 0.0 }
  0xfd   :  { %v342_v28 = vmax.f32 %v254_v23, 0.0 }
  0xfe   :  { %v368_v30 = vpack.c.bf16 %v344_v25, %v343_v24 }
  0xff   :  { %v367_v31 = vpack.c.bf16 %v342_v28, %v341_v27  ;;  %v1905_v32 = vpop.f32.mrb[16].mxu0 }
 0x100   :  { %v275_v33 = vadd.f32 %v1905_v32, %v2343_v58  ;;  %v266_v34 = vpop.f32.mrb[17].mxu0 }
 0x101   :  { %v267_v35 = vadd.f32 %v2343_v58, %v266_v34  ;;  %v1906_v36 = vpop.f32.mrb[18].mxu0  ;;  %1939 = vmatprep.mubr.msk.bf16.mxu1 %vm416_vm1, %v367_v31 }
 0x102   :  { %v278_v37 = vadd.f32 %v1906_v36, %v2343_v58  ;;  %v269_v38 = vpop.f32.mrb[19].mxu0  ;;  %1940 = vmatmul.mubr.msk.bf16.gmra.mrb[24].mxu1 %vm416_vm1, %v368_v30  ;;  %v347_v40 = vmax.f32 %v275_v33, 0.0 }
 0x103   :  { %v270_v39 = vadd.f32 %v2343_v58, %v269_v38  ;;  %v345_v42 = vmax.f32 %v267_v35, 0.0  ;;  %v2096_v58 = vld [vmem:[%s2679_s5 + $0x18] sm:$0xff]  }
 0x104   :  { %v348_v41 = vmax.f32 %v278_v37, 0.0  ;;  %1965 = vmatprep.subr.bf16.mxu0 %v2096_v58 }
 0x105   :  { %v346_v43 = vmax.f32 %v270_v39, 0.0  ;;  %1966 = vmatpush3.bf16.msra.mxu0 %v2096_v58 }
 0x106   :  { %v370_v44 = vpack.c.bf16 %v348_v41, %v347_v40 }
 0x107   :  { %v369_v45 = vpack.c.bf16 %v346_v43, %v345_v42 }
 0x109   :  { %1943 = vmatprep.mubr.msk.bf16.mxu1 %vm416_vm1, %v369_v45 }
 0x10a   :  { %1944 = vmatmul.mubr.msk.bf16.gmra.mrb[28].mxu1 %vm416_vm1, %v370_v44 }
 0x10b   :  { %1947 = vmatprep.mubr.msk.bf16.mxu1 %vm416_vm1, %v2360_v29  ;;  %v2097_v29 = vld [vmem:[%s2681_s7] sm:$0xff]  }
 0x10c   :  { %1999 = vmatprep.subr.bf16.mxu1 %v2097_v29 }
 0x10d   :  { %2000 = vmatpush3.bf16.msra.mxu1 %v2097_v29 }
 0x112   :  { %1948 = vmatmul.mubr.msk.bf16.gmra.mrb[32].mxu1 %vm416_vm1, %v2356_v26  ;;  %v2098_v26 = vld [vmem:[%s2681_s7 + $0x8] sm:$0xff]  }
 0x113   :  { %1951 = vmatprep.mubr.msk.bf16.mxu1 %vm416_vm1, %v373_v57  ;;  %2001 = vmatprep.subr.bf16.mxu1 %v2098_v26 }
 0x114   :  { %2002 = vmatpush3.bf16.msra.mxu1 %v2098_v26 }
 0x11a   :  { %1952 = vmatmul.mubr.msk.bf16.gmra.mrb[36].mxu1 %vm416_vm1, %v2370_v54 }
 0x11b   :  { %1955 = vmatprep.mubr.msk.bf16.mxu1 %vm416_vm1, %v375_v22 }
 0x122   :  { %1956 = vmatmul.mubr.msk.bf16.gmra.mrb[40].mxu1 %vm416_vm1, %v376_v19 }
 0x1bd   :  { %v1929_v47 = vpop.f32.mrb[12].mxu1 }
 0x1be   :  { %v508_v48 = vadd.f32 %v1929_v47, %v2414_v46  ;;  %v499_v49 = vpop.f32.mrb[13].mxu1 }
 0x1bf   :  { %v500_v50 = vadd.f32 %v2414_v46, %v499_v49  ;;  %v1930_v51 = vpop.f32.mrb[14].mxu1 }
 0x1c0   :  { %v511_v52 = vadd.f32 %v1930_v51, %v2414_v46  ;;  %v502_v53 = vpop.f32.mrb[15].mxu1  ;;  %v628_v55 = vmax.f32 %v508_v48, 0.0 }
 0x1c1   :  { %v503_v54 = vadd.f32 %v2414_v46, %v502_v53  ;;  %v626_v57 = vmax.f32 %v500_v50, 0.0 }
 0x1c2   :  { %v629_v56 = vmax.f32 %v511_v52, 0.0 }
 0x1c3   :  { %v627_v59 = vmax.f32 %v503_v54, 0.0 }
 0x1c4   :  { %v659_v60 = vpack.c.bf16 %v629_v56, %v628_v55 }
 0x1c5   :  { %v658_v61 = vpack.c.bf16 %v627_v59, %v626_v57  ;;  %v1933_v62 = vpop.f32.mrb[16].mxu1 }
 0x1c6   :  { %v524_v63 = vadd.f32 %v1933_v62, %v2414_v46  ;;  %v515_v0 = vpop.f32.mrb[17].mxu1 }
 0x1c7   :  { %v516_v1 = vadd.f32 %v2414_v46, %v515_v0  ;;  %v1934_v2 = vpop.f32.mrb[18].mxu1  ;;  %1967 = vmatprep.mubr.msk.bf16.mxu0 %vm416_vm1, %v658_v61 }
 0x1c8   :  { %v527_v3 = vadd.f32 %v1934_v2, %v2414_v46  ;;  %v518_v4 = vpop.f32.mrb[19].mxu1  ;;  %1968 = vmatmul.mubr.msk.bf16.vlgmr.msra.gmra.mrb[20].mxu0 %vm416_vm1, %v659_v60  ;;  %v632_v6 = vmax.f32 %v524_v63, 0.0 }
 0x1c9   :  { %v519_v5 = vadd.f32 %v2414_v46, %v518_v4  ;;  %v630_v8 = vmax.f32 %v516_v1, 0.0 }
 0x1ca   :  { %v633_v7 = vmax.f32 %v527_v3, 0.0 }
 0x1cb   :  { %v631_v9 = vmax.f32 %v519_v5, 0.0 }
 0x1cc   :  { %v661_v10 = vpack.c.bf16 %v633_v7, %v632_v6 }
 0x1cd   :  { %v660_v11 = vpack.c.bf16 %v631_v9, %v630_v8  ;;  %v1937_v12 = vpop.f32.mrb[20].mxu1 }
 0x1ce   :  { %v540_v13 = vadd.f32 %v1937_v12, %v2414_v46  ;;  %v531_v14 = vpop.f32.mrb[21].mxu1 }
 0x1cf   :  { %v532_v15 = vadd.f32 %v2414_v46, %v531_v14  ;;  %v1938_v16 = vpop.f32.mrb[22].mxu1  ;;  %1971 = vmatprep.mubr.msk.bf16.mxu0 %vm416_vm1, %v660_v11 }
 0x1d0   :  { %v543_v17 = vadd.f32 %v1938_v16, %v2414_v46  ;;  %v534_v18 = vpop.f32.mrb[23].mxu1  ;;  %1972 = vmatmul.mubr.msk.bf16.gmra.mrb[24].mxu0 %vm416_vm1, %v661_v10  ;;  %v636_v20 = vmax.f32 %v540_v13, 0.0 }
 0x1d1   :  { %v535_v19 = vadd.f32 %v2414_v46, %v534_v18  ;;  %v634_v22 = vmax.f32 %v532_v15, 0.0 }
 0x1d2   :  { %v637_v21 = vmax.f32 %v543_v17, 0.0 }
 0x1d3   :  { %v635_v23 = vmax.f32 %v535_v19, 0.0 }
 0x1d4   :  { %v663_v24 = vpack.c.bf16 %v637_v21, %v636_v20 }
 0x1d5   :  { %v662_v25 = vpack.c.bf16 %v635_v23, %v634_v22  ;;  %v1941_v27 = vpop.f32.mrb[24].mxu1 }
 0x1d6   :  { %v556_v28 = vadd.f32 %v1941_v27, %v2414_v46  ;;  %v547_v30 = vpop.f32.mrb[25].mxu1 }
 0x1d7   :  { %v548_v31 = vadd.f32 %v2414_v46, %v547_v30  ;;  %v1942_v32 = vpop.f32.mrb[26].mxu1  ;;  %1975 = vmatprep.mubr.msk.bf16.mxu0 %vm416_vm1, %v662_v25 }
 0x1d8   :  { %v559_v33 = vadd.f32 %v1942_v32, %v2414_v46  ;;  %v550_v34 = vpop.f32.mrb[27].mxu1  ;;  %1976 = vmatmul.mubr.msk.bf16.gmra.mrb[28].mxu0 %vm416_vm1, %v663_v24  ;;  %v640_v36 = vmax.f32 %v556_v28, 0.0 }
 0x1d9   :  { %v551_v35 = vadd.f32 %v2414_v46, %v550_v34  ;;  %v638_v38 = vmax.f32 %v548_v31, 0.0 }
 0x1da   :  { %v641_v37 = vmax.f32 %v559_v33, 0.0 }
 0x1db   :  { %v639_v39 = vmax.f32 %v551_v35, 0.0  ;;  %v2099_v35 = vld [vmem:[%s2683_s9] sm:$0xff]  }
 0x1dc   :  { %v665_v40 = vpack.c.bf16 %v641_v37, %v640_v36  ;;  %v2100_v36 = vld [vmem:[%s2683_s9 + $0x8] sm:$0xff]   ;;  %2035 = vmatprep.subr.bf16.mxu0 %v2099_v35 }
 0x1dd   :  { %v664_v41 = vpack.c.bf16 %v639_v39, %v638_v38  ;;  %v1945_v42 = vpop.f32.mrb[28].mxu1  ;;  %2036 = vmatpush3.bf16.msra.mxu0 %v2099_v35 }
 0x1de   :  { %v572_v43 = vadd.f32 %v1945_v42, %v2414_v46  ;;  %v563_v44 = vpop.f32.mrb[29].mxu1  ;;  %2037 = vmatprep.subr.bf16.mxu0 %v2100_v36 }
 0x1df   :  { %v564_v45 = vadd.f32 %v2414_v46, %v563_v44  ;;  %v1946_v58 = vpop.f32.mrb[30].mxu1  ;;  %1979 = vmatprep.mubr.msk.bf16.mxu0 %vm416_vm1, %v664_v41 }
 0x1e0   :  { %v575_v29 = vadd.f32 %v1946_v58, %v2414_v46  ;;  %v566_v26 = vpop.f32.mrb[31].mxu1  ;;  %1980 = vmatmul.mubr.msk.bf16.gmra.mrb[32].mxu0 %vm416_vm1, %v665_v40  ;;  %v644_v48 = vmax.f32 %v572_v43, 0.0 }
 0x1e1   :  { %v567_v47 = vadd.f32 %v2414_v46, %v566_v26  ;;  %v642_v50 = vmax.f32 %v564_v45, 0.0  ;;  %2038 = vmatpush3.bf16.msra.mxu0 %v2100_v36 }
 0x1e2   :  { %v645_v49 = vmax.f32 %v575_v29, 0.0 }
 0x1e3   :  { %v643_v51 = vmax.f32 %v567_v47, 0.0 }
 0x1e4   :  { %v667_v52 = vpack.c.bf16 %v645_v49, %v644_v48 }
 0x1e5   :  { %v666_v53 = vpack.c.bf16 %v643_v51, %v642_v50  ;;  %v1949_v54 = vpop.f32.mrb[32].mxu1 }
 0x1e6   :  { %v588_v55 = vadd.f32 %v1949_v54, %v2414_v46  ;;  %v579_v56 = vpop.f32.mrb[33].mxu1 }
 0x1e7   :  { %v580_v57 = vadd.f32 %v2414_v46, %v579_v56  ;;  %v1950_v59 = vpop.f32.mrb[34].mxu1  ;;  %1983 = vmatprep.mubr.msk.bf16.mxu0 %vm416_vm1, %v666_v53 }
 0x1e8   :  { %v648_v60 = vmax.f32 %v588_v55, 0.0  ;;  %v591_v61 = vadd.f32 %v1950_v59, %v2414_v46  ;;  %v582_v62 = vpop.f32.mrb[35].mxu1  ;;  %1984 = vmatmul.mubr.msk.bf16.gmra.mrb[36].mxu0 %vm416_vm1, %v667_v52 }
 0x1e9   :  { %v646_v63 = vmax.f32 %v580_v57, 0.0  ;;  %v583_v0 = vadd.f32 %v2414_v46, %v582_v62 }
 0x1ea   :  { %v649_v1 = vmax.f32 %v591_v61, 0.0 }
 0x1eb   :  { %v647_v2 = vmax.f32 %v583_v0, 0.0 }
 0x1ec   :  { %v669_v3 = vpack.c.bf16 %v649_v1, %v648_v60 }
 0x1ed   :  { %v668_v4 = vpack.c.bf16 %v647_v2, %v646_v63  ;;  %v1953_v5 = vpop.f32.mrb[36].mxu1 }
 0x1ee   :  { %v604_v6 = vadd.f32 %v1953_v5, %v2414_v46  ;;  %v595_v7 = vpop.f32.mrb[37].mxu1 }
 0x1ef   :  { %v596_v8 = vadd.f32 %v2414_v46, %v595_v7  ;;  %v1954_v9 = vpop.f32.mrb[38].mxu1  ;;  %1987 = vmatprep.mubr.msk.bf16.mxu0 %vm416_vm1, %v668_v4 }
 0x1f0   :  { %v652_v10 = vmax.f32 %v604_v6, 0.0  ;;  %v607_v11 = vadd.f32 %v1954_v9, %v2414_v46  ;;  %v598_v12 = vpop.f32.mrb[39].mxu1  ;;  %1988 = vmatmul.mubr.msk.bf16.gmra.mrb[40].mxu0 %vm416_vm1, %v669_v3 }
 0x1f1   :  { %v650_v13 = vmax.f32 %v596_v8, 0.0  ;;  %v599_v14 = vadd.f32 %v2414_v46, %v598_v12 }
 0x1f2   :  { %v653_v15 = vmax.f32 %v607_v11, 0.0 }
 0x1f3   :  { %v651_v16 = vmax.f32 %v599_v14, 0.0 }
 0x1f4   :  { %v671_v17 = vpack.c.bf16 %v653_v15, %v652_v10 }
 0x1f5   :  { %v670_v18 = vpack.c.bf16 %v651_v16, %v650_v13  ;;  %v1957_v19 = vpop.f32.mrb[40].mxu1 }
 0x1f6   :  { %v620_v20 = vadd.f32 %v1957_v19, %v2414_v46  ;;  %v611_v21 = vpop.f32.mrb[41].mxu1 }
 0x1f7   :  { %1991 = vmatprep.mubr.msk.bf16.mxu0 %vm416_vm1, %v670_v18  ;;  %v612_v22 = vadd.f32 %v2414_v46, %v611_v21  ;;  %v1958_v23 = vpop.f32.mrb[42].mxu1 }
 0x1f8   :  { %1992 = vmatmul.mubr.msk.bf16.gmra.mrb[44].mxu0 %vm416_vm1, %v671_v17  ;;  %v656_v24 = vmax.f32 %v620_v20, 0.0  ;;  %v623_v25 = vadd.f32 %v1958_v23, %v2414_v46  ;;  %v614_v27 = vpop.f32.mrb[43].mxu1 }
 0x1f9   :  { %v654_v28 = vmax.f32 %v612_v22, 0.0  ;;  %v615_v30 = vadd.f32 %v2414_v46, %v614_v27  ;;  %v2473_v46 = vld [vmem:[%s2680_s6] ss:$0 sm:$0xff] }
 0x1fa   :  { %v657_v31 = vmax.f32 %v623_v25, 0.0 }
 0x1fb   :  { %v655_v32 = vmax.f32 %v615_v30, 0.0 }
 0x1fc   :  { %v673_v33 = vpack.c.bf16 %v657_v31, %v656_v24 }
 0x1fd   :  { %v672_v34 = vpack.c.bf16 %v655_v32, %v654_v28 }
 0x1ff   :  { %1995 = vmatprep.mubr.msk.bf16.mxu0 %vm416_vm1, %v672_v34 }
 0x200   :  { %1996 = vmatmul.mubr.msk.bf16.gmra.mrb[48].mxu0 %vm416_vm1, %v673_v33 }
 0x29b   :  { %v1969_v37 = vpop.f32.mrb[20].mxu0 }
 0x29c   :  { %v804_v38 = vadd.f32 %v1969_v37, %v2473_v46  ;;  %v795_v39 = vpop.f32.mrb[21].mxu0 }
 0x29d   :  { %v796_v40 = vadd.f32 %v2473_v46, %v795_v39  ;;  %v1970_v41 = vpop.f32.mrb[22].mxu0 }
 0x29e   :  { %v807_v42 = vadd.f32 %v1970_v41, %v2473_v46  ;;  %v798_v43 = vpop.f32.mrb[23].mxu0  ;;  %v924_v45 = vmax.f32 %v804_v38, 0.0 }
 0x29f   :  { %v799_v44 = vadd.f32 %v2473_v46, %v798_v43  ;;  %v922_v29 = vmax.f32 %v796_v40, 0.0 }
 0x2a0   :  { %v925_v58 = vmax.f32 %v807_v42, 0.0 }
 0x2a1   :  { %v923_v26 = vmax.f32 %v799_v44, 0.0 }
 0x2a2   :  { %v955_v47 = vpack.c.bf16 %v925_v58, %v924_v45 }
 0x2a3   :  { %v954_v48 = vpack.c.bf16 %v923_v26, %v922_v29  ;;  %v1973_v49 = vpop.f32.mrb[24].mxu0 }
 0x2a4   :  { %v820_v50 = vadd.f32 %v1973_v49, %v2473_v46  ;;  %v811_v51 = vpop.f32.mrb[25].mxu0 }
 0x2a5   :  { %v812_v52 = vadd.f32 %v2473_v46, %v811_v51  ;;  %v1974_v53 = vpop.f32.mrb[26].mxu0  ;;  %2003 = vmatprep.mubr.msk.bf16.mxu1 %vm119_vm0, %v954_v48 }
 0x2a6   :  { %v823_v54 = vadd.f32 %v1974_v53, %v2473_v46  ;;  %v814_v55 = vpop.f32.mrb[27].mxu0  ;;  %2004 = vmatmul.mubr.msk.bf16.vlgmr.msra.gmra.mrb[44].mxu1 %vm119_vm0, %v955_v47  ;;  %v928_v57 = vmax.f32 %v820_v50, 0.0 }
 0x2a7   :  { %v815_v56 = vadd.f32 %v2473_v46, %v814_v55  ;;  %v926_v60 = vmax.f32 %v812_v52, 0.0 }
 0x2a8   :  { %v929_v59 = vmax.f32 %v823_v54, 0.0 }
 0x2a9   :  { %v927_v61 = vmax.f32 %v815_v56, 0.0 }
 0x2aa   :  { %v957_v62 = vpack.c.bf16 %v929_v59, %v928_v57 }
 0x2ab   :  { %v956_v63 = vpack.c.bf16 %v927_v61, %v926_v60  ;;  %v1977_v0 = vpop.f32.mrb[28].mxu0 }
 0x2ac   :  { %v836_v1 = vadd.f32 %v1977_v0, %v2473_v46  ;;  %v827_v2 = vpop.f32.mrb[29].mxu0 }
 0x2ad   :  { %v828_v3 = vadd.f32 %v2473_v46, %v827_v2  ;;  %v1978_v4 = vpop.f32.mrb[30].mxu0  ;;  %2007 = vmatprep.mubr.msk.bf16.mxu1 %vm119_vm0, %v956_v63 }
 0x2ae   :  { %v839_v5 = vadd.f32 %v1978_v4, %v2473_v46  ;;  %v830_v6 = vpop.f32.mrb[31].mxu0  ;;  %2008 = vmatmul.mubr.msk.bf16.gmra.mrb[48].mxu1 %vm119_vm0, %v957_v62  ;;  %v932_v8 = vmax.f32 %v836_v1, 0.0 }
 0x2af   :  { %v831_v7 = vadd.f32 %v2473_v46, %v830_v6  ;;  %v930_v10 = vmax.f32 %v828_v3, 0.0 }
 0x2b0   :  { %v933_v9 = vmax.f32 %v839_v5, 0.0 }
 0x2b1   :  { %v931_v11 = vmax.f32 %v831_v7, 0.0 }
 0x2b2   :  { %v959_v12 = vpack.c.bf16 %v933_v9, %v932_v8 }
 0x2b3   :  { %v958_v13 = vpack.c.bf16 %v931_v11, %v930_v10  ;;  %v1981_v14 = vpop.f32.mrb[32].mxu0 }
 0x2b4   :  { %v852_v15 = vadd.f32 %v1981_v14, %v2473_v46  ;;  %v843_v16 = vpop.f32.mrb[33].mxu0 }
 0x2b5   :  { %v844_v17 = vadd.f32 %v2473_v46, %v843_v16  ;;  %v1982_v18 = vpop.f32.mrb[34].mxu0  ;;  %2011 = vmatprep.mubr.msk.bf16.mxu1 %vm119_vm0, %v958_v13 }
 0x2b6   :  { %v855_v19 = vadd.f32 %v1982_v18, %v2473_v46  ;;  %v846_v20 = vpop.f32.mrb[35].mxu0  ;;  %2012 = vmatmul.mubr.msk.bf16.gmra.mrb[52].mxu1 %vm119_vm0, %v959_v12  ;;  %v936_v22 = vmax.f32 %v852_v15, 0.0 }
 0x2b7   :  { %v847_v21 = vadd.f32 %v2473_v46, %v846_v20  ;;  %v934_v24 = vmax.f32 %v844_v17, 0.0 }
 0x2b8   :  { %v937_v23 = vmax.f32 %v855_v19, 0.0 }
 0x2b9   :  { %v935_v25 = vmax.f32 %v847_v21, 0.0  ;;  %v2526_v21 = vld [vmem:[%s2682_s8] ss:$0 sm:$0xff] }
 0x2ba   :  { %v961_v27 = vpack.c.bf16 %v937_v23, %v936_v22 }
 0x2bb   :  { %v960_v28 = vpack.c.bf16 %v935_v25, %v934_v24  ;;  %v1985_v30 = vpop.f32.mrb[36].mxu0 }
 0x2bc   :  { %v868_v31 = vadd.f32 %v1985_v30, %v2473_v46  ;;  %v859_v32 = vpop.f32.mrb[37].mxu0 }
 0x2bd   :  { %v860_v33 = vadd.f32 %v2473_v46, %v859_v32  ;;  %v1986_v34 = vpop.f32.mrb[38].mxu0  ;;  %2015 = vmatprep.mubr.msk.bf16.mxu1 %vm119_vm0, %v960_v28 }
 0x2be   :  { %v871_v35 = vadd.f32 %v1986_v34, %v2473_v46  ;;  %v862_v36 = vpop.f32.mrb[39].mxu0  ;;  %2016 = vmatmul.mubr.msk.bf16.gmra.mrb[56].mxu1 %vm119_vm0, %v961_v27  ;;  %v940_v38 = vmax.f32 %v868_v31, 0.0 }
 0x2bf   :  { %v863_v37 = vadd.f32 %v2473_v46, %v862_v36  ;;  %v938_v40 = vmax.f32 %v860_v33, 0.0 }
 0x2c0   :  { %v941_v39 = vmax.f32 %v871_v35, 0.0 }
 0x2c1   :  { %v939_v41 = vmax.f32 %v863_v37, 0.0 }
 0x2c2   :  { %v963_v42 = vpack.c.bf16 %v941_v39, %v940_v38 }
 0x2c3   :  { %v962_v43 = vpack.c.bf16 %v939_v41, %v938_v40  ;;  %v1989_v44 = vpop.f32.mrb[40].mxu0 }
 0x2c4   :  { %v884_v45 = vadd.f32 %v1989_v44, %v2473_v46  ;;  %v875_v58 = vpop.f32.mrb[41].mxu0 }
 0x2c5   :  { %v876_v29 = vadd.f32 %v2473_v46, %v875_v58  ;;  %v1990_v26 = vpop.f32.mrb[42].mxu0  ;;  %2019 = vmatprep.mubr.msk.bf16.mxu1 %vm119_vm0, %v962_v43 }
 0x2c6   :  { %v887_v47 = vadd.f32 %v1990_v26, %v2473_v46  ;;  %v878_v48 = vpop.f32.mrb[43].mxu0  ;;  %2020 = vmatmul.mubr.msk.bf16.gmra.mrb[60].mxu1 %vm119_vm0, %v963_v42  ;;  %v944_v50 = vmax.f32 %v884_v45, 0.0 }
 0x2c7   :  { %v879_v49 = vadd.f32 %v2473_v46, %v878_v48  ;;  %v942_v52 = vmax.f32 %v876_v29, 0.0 }
 0x2c8   :  { %v945_v51 = vmax.f32 %v887_v47, 0.0 }
 0x2c9   :  { %v943_v53 = vmax.f32 %v879_v49, 0.0 }
 0x2ca   :  { %v965_v54 = vpack.c.bf16 %v945_v51, %v944_v50 }
 0x2cb   :  { %v964_v55 = vpack.c.bf16 %v943_v53, %v942_v52  ;;  %v1993_v56 = vpop.f32.mrb[44].mxu0 }
 0x2cc   :  { %v900_v57 = vadd.f32 %v1993_v56, %v2473_v46  ;;  %v891_v59 = vpop.f32.mrb[45].mxu0 }
 0x2cd   :  { %v892_v60 = vadd.f32 %v2473_v46, %v891_v59  ;;  %v1994_v61 = vpop.f32.mrb[46].mxu0  ;;  %2023 = vmatprep.mubr.msk.bf16.mxu1 %vm119_vm0, %v964_v55 }
 0x2ce   :  { %v948_v62 = vmax.f32 %v900_v57, 0.0  ;;  %v903_v63 = vadd.f32 %v1994_v61, %v2473_v46  ;;  %v894_v0 = vpop.f32.mrb[47].mxu0  ;;  %2024 = vmatmul.mubr.msk.bf16.gmra.mrb[64].mxu1 %vm119_vm0, %v965_v54 }
 0x2cf   :  { %v946_v1 = vmax.f32 %v892_v60, 0.0  ;;  %v895_v2 = vadd.f32 %v2473_v46, %v894_v0 }
 0x2d0   :  { %v949_v3 = vmax.f32 %v903_v63, 0.0 }
 0x2d1   :  { %v947_v4 = vmax.f32 %v895_v2, 0.0 }
 0x2d2   :  { %v967_v5 = vpack.c.bf16 %v949_v3, %v948_v62 }
 0x2d3   :  { %v966_v6 = vpack.c.bf16 %v947_v4, %v946_v1  ;;  %v1997_v7 = vpop.f32.mrb[48].mxu0 }
 0x2d4   :  { %v916_v8 = vadd.f32 %v1997_v7, %v2473_v46  ;;  %v907_v9 = vpop.f32.mrb[49].mxu0 }
 0x2d5   :  { %2027 = vmatprep.mubr.msk.bf16.mxu1 %vm119_vm0, %v966_v6  ;;  %v908_v10 = vadd.f32 %v2473_v46, %v907_v9  ;;  %v1998_v11 = vpop.f32.mrb[50].mxu0 }
 0x2d6   :  { %2028 = vmatmul.mubr.msk.bf16.gmra.mrb[68].mxu1 %vm119_vm0, %v967_v5  ;;  %v952_v12 = vmax.f32 %v916_v8, 0.0  ;;  %v919_v13 = vadd.f32 %v1998_v11, %v2473_v46  ;;  %v910_v14 = vpop.f32.mrb[51].mxu0 }
 0x2d7   :  { %v950_v15 = vmax.f32 %v908_v10, 0.0  ;;  %v911_v16 = vadd.f32 %v2473_v46, %v910_v14 }
 0x2d8   :  { %v953_v17 = vmax.f32 %v919_v13, 0.0 }
 0x2d9   :  { %v951_v18 = vmax.f32 %v911_v16, 0.0 }
 0x2da   :  { %v969_v19 = vpack.c.bf16 %v953_v17, %v952_v12 }
 0x2db   :  { %v968_v20 = vpack.c.bf16 %v951_v18, %v950_v15 }
 0x2dd   :  { %2031 = vmatprep.mubr.msk.bf16.mxu1 %vm119_vm0, %v968_v20 }
 0x2de   :  { %2032 = vmatmul.mubr.msk.bf16.gmra.mrb[72].mxu1 %vm119_vm0, %v969_v19 }
 0x379   :  { %v2005_v22 = vpop.f32.mrb[44].mxu1 }
 0x37a   :  { %v1084_v23 = vadd.f32 %v2005_v22, %v2526_v21  ;;  %v1075_v24 = vpop.f32.mrb[45].mxu1 }
 0x37b   :  { %v1076_v25 = vadd.f32 %v2526_v21, %v1075_v24  ;;  %v2006_v46 = vpop.f32.mrb[46].mxu1 }
 0x37c   :  { %v1087_v27 = vadd.f32 %v2006_v46, %v2526_v21  ;;  %v1078_v28 = vpop.f32.mrb[47].mxu1  ;;  %v1204_v31 = vmax.f32 %v1084_v23, 0.0 }
 0x37d   :  { %v1079_v30 = vadd.f32 %v2526_v21, %v1078_v28  ;;  %v1202_v33 = vmax.f32 %v1076_v25, 0.0 }
 0x37e   :  { %v1205_v32 = vmax.f32 %v1087_v27, 0.0 }
 0x37f   :  { %v1203_v34 = vmax.f32 %v1079_v30, 0.0 }
 0x380   :  { %v1235_v35 = vpack.c.bf16 %v1205_v32, %v1204_v31 }
 0x381   :  { %v1234_v36 = vpack.c.bf16 %v1203_v34, %v1202_v33  ;;  %v2009_v37 = vpop.f32.mrb[48].mxu1 }
 0x382   :  { %v1100_v38 = vadd.f32 %v2009_v37, %v2526_v21  ;;  %v1091_v39 = vpop.f32.mrb[49].mxu1 }
 0x383   :  { %v1092_v40 = vadd.f32 %v2526_v21, %v1091_v39  ;;  %v2010_v41 = vpop.f32.mrb[50].mxu1  ;;  %2039 = vmatprep.mubr.msk.bf16.mxu0 %vm119_vm0, %v1234_v36 }
 0x384   :  { %v1103_v42 = vadd.f32 %v2010_v41, %v2526_v21  ;;  %v1094_v43 = vpop.f32.mrb[51].mxu1  ;;  %2040 = vmatmul.mubr.msk.bf16.vlgmr.msra.gmra.mrb[52].mxu0 %vm119_vm0, %v1235_v35  ;;  %v1208_v45 = vmax.f32 %v1100_v38, 0.0 }
 0x385   :  { %v1095_v44 = vadd.f32 %v2526_v21, %v1094_v43  ;;  %v1206_v29 = vmax.f32 %v1092_v40, 0.0 }
 0x386   :  { %v1209_v58 = vmax.f32 %v1103_v42, 0.0 }
 0x387   :  { %v1207_v26 = vmax.f32 %v1095_v44, 0.0 }
 0x388   :  { %v1237_v47 = vpack.c.bf16 %v1209_v58, %v1208_v45 }
 0x389   :  { %v1236_v48 = vpack.c.bf16 %v1207_v26, %v1206_v29  ;;  %v2013_v49 = vpop.f32.mrb[52].mxu1 }
 0x38a   :  { %v1116_v50 = vadd.f32 %v2013_v49, %v2526_v21  ;;  %v1107_v51 = vpop.f32.mrb[53].mxu1 }
 0x38b   :  { %v1108_v52 = vadd.f32 %v2526_v21, %v1107_v51  ;;  %v2014_v53 = vpop.f32.mrb[54].mxu1  ;;  %2043 = vmatprep.mubr.msk.bf16.mxu0 %vm119_vm0, %v1236_v48 }
 0x38c   :  { %v1119_v54 = vadd.f32 %v2014_v53, %v2526_v21  ;;  %v1110_v55 = vpop.f32.mrb[55].mxu1  ;;  %2044 = vmatmul.mubr.msk.bf16.gmra.mrb[56].mxu0 %vm119_vm0, %v1237_v47  ;;  %v1212_v57 = vmax.f32 %v1116_v50, 0.0 }
 0x38d   :  { %v1111_v56 = vadd.f32 %v2526_v21, %v1110_v55  ;;  %v1210_v60 = vmax.f32 %v1108_v52, 0.0 }
 0x38e   :  { %v1213_v59 = vmax.f32 %v1119_v54, 0.0 }
 0x38f   :  { %v1211_v61 = vmax.f32 %v1111_v56, 0.0 }
 0x390   :  { %v1239_v62 = vpack.c.bf16 %v1213_v59, %v1212_v57 }
 0x391   :  { %v1238_v63 = vpack.c.bf16 %v1211_v61, %v1210_v60  ;;  %v2017_v0 = vpop.f32.mrb[56].mxu1 }
 0x392   :  { %v1132_v1 = vadd.f32 %v2017_v0, %v2526_v21  ;;  %v1123_v2 = vpop.f32.mrb[57].mxu1 }
 0x393   :  { %v1124_v3 = vadd.f32 %v2526_v21, %v1123_v2  ;;  %v2018_v4 = vpop.f32.mrb[58].mxu1  ;;  %2047 = vmatprep.mubr.msk.bf16.mxu0 %vm119_vm0, %v1238_v63 }
 0x394   :  { %v1135_v5 = vadd.f32 %v2018_v4, %v2526_v21  ;;  %v1126_v6 = vpop.f32.mrb[59].mxu1  ;;  %2048 = vmatmul.mubr.msk.bf16.gmra.mrb[60].mxu0 %vm119_vm0, %v1239_v62  ;;  %v1216_v8 = vmax.f32 %v1132_v1, 0.0 }
 0x395   :  { %v1127_v7 = vadd.f32 %v2526_v21, %v1126_v6  ;;  %v1214_v10 = vmax.f32 %v1124_v3, 0.0 }
 0x396   :  { %v1217_v9 = vmax.f32 %v1135_v5, 0.0 }
 0x397   :  { %v1215_v11 = vmax.f32 %v1127_v7, 0.0  ;;  %v2579_v7 = vld [vmem:[%s2685_s11] sm:$0x1] }
 0x398   :  { %v1241_v12 = vpack.c.bf16 %v1217_v9, %v1216_v8  ;;  %1881 = vmatprep.mubr.msk.bf16.mxu1 %vm1541_vm2, %v2579_v7  ;;  %v1531_v8 = vld [vmem:[#allocation2] sm:$0x1]  ;;  %v2125_v9 = vmov 0  }
 0x399   :  { %v1240_v13 = vpack.c.bf16 %v1215_v11, %v1214_v10  ;;  %v2021_v14 = vpop.f32.mrb[60].mxu1  ;;  %2086 = vset.pattern.permute.xlu0 %v2125_v9 }
 0x39a   :  { %v1148_v15 = vadd.f32 %v2021_v14, %v2526_v21  ;;  %v1139_v16 = vpop.f32.mrb[61].mxu1  ;;  %1534 = vperm.xlu0 %2086, %v1531_v8  }
 0x39b   :  { %v1140_v17 = vadd.f32 %v2526_v21, %v1139_v16  ;;  %v2022_v18 = vpop.f32.mrb[62].mxu1  ;;  %2051 = vmatprep.mubr.msk.bf16.mxu0 %vm119_vm0, %v1240_v13 }
 0x39c   :  { %v1151_v19 = vadd.f32 %v2022_v18, %v2526_v21  ;;  %v1142_v20 = vpop.f32.mrb[63].mxu1  ;;  %2052 = vmatmul.mubr.msk.bf16.gmra.mrb[64].mxu0 %vm119_vm0, %v1241_v12  ;;  %v1220_v23 = vmax.f32 %v1148_v15, 0.0 }
 0x39d   :  { %v1143_v22 = vadd.f32 %v2526_v21, %v1142_v20  ;;  %v1218_v25 = vmax.f32 %v1140_v17, 0.0 }
 0x39e   :  { %v1221_v24 = vmax.f32 %v1151_v19, 0.0 }
 0x39f   :  { %v1219_v46 = vmax.f32 %v1143_v22, 0.0 }
 0x3a0   :  { %v1243_v27 = vpack.c.bf16 %v1221_v24, %v1220_v23 }
 0x3a1   :  { %v1242_v28 = vpack.c.bf16 %v1219_v46, %v1218_v25  ;;  %v2025_v30 = vpop.f32.mrb[64].mxu1 }
 0x3a2   :  { %v1164_v31 = vadd.f32 %v2025_v30, %v2526_v21  ;;  %v1155_v32 = vpop.f32.mrb[65].mxu1 }
 0x3a3   :  { %v1156_v33 = vadd.f32 %v2526_v21, %v1155_v32  ;;  %v2026_v34 = vpop.f32.mrb[66].mxu1  ;;  %2055 = vmatprep.mubr.msk.bf16.mxu0 %vm119_vm0, %v1242_v28 }
 0x3a4   :  { %v1167_v35 = vadd.f32 %v2026_v34, %v2526_v21  ;;  %v1158_v36 = vpop.f32.mrb[67].mxu1  ;;  %2056 = vmatmul.mubr.msk.bf16.gmra.mrb[68].mxu0 %vm119_vm0, %v1243_v27  ;;  %v1224_v38 = vmax.f32 %v1164_v31, 0.0 }
 0x3a5   :  { %v1159_v37 = vadd.f32 %v2526_v21, %v1158_v36  ;;  %v1222_v40 = vmax.f32 %v1156_v33, 0.0 }
 0x3a6   :  { %v1225_v39 = vmax.f32 %v1167_v35, 0.0 }
 0x3a7   :  { %v1223_v41 = vmax.f32 %v1159_v37, 0.0 }
 0x3a8   :  { %v1245_v42 = vpack.c.bf16 %v1225_v39, %v1224_v38 }
 0x3a9   :  { %v1244_v43 = vpack.c.bf16 %v1223_v41, %v1222_v40  ;;  %v2029_v44 = vpop.f32.mrb[68].mxu1 }
 0x3aa   :  { %v1180_v45 = vadd.f32 %v2029_v44, %v2526_v21  ;;  %v1171_v58 = vpop.f32.mrb[69].mxu1 }
 0x3ab   :  { %v1172_v29 = vadd.f32 %v2526_v21, %v1171_v58  ;;  %v2030_v26 = vpop.f32.mrb[70].mxu1  ;;  %2059 = vmatprep.mubr.msk.bf16.mxu0 %vm119_vm0, %v1244_v43 }
 0x3ac   :  { %v1228_v47 = vmax.f32 %v1180_v45, 0.0  ;;  %v1183_v48 = vadd.f32 %v2030_v26, %v2526_v21  ;;  %v1174_v49 = vpop.f32.mrb[71].mxu1  ;;  %2060 = vmatmul.mubr.msk.bf16.gmra.mrb[72].mxu0 %vm119_vm0, %v1245_v42 }
 0x3ad   :  { %v1226_v50 = vmax.f32 %v1172_v29, 0.0  ;;  %v1175_v51 = vadd.f32 %v2526_v21, %v1174_v49 }
 0x3ae   :  { %v1229_v52 = vmax.f32 %v1183_v48, 0.0 }
 0x3af   :  { %v1227_v53 = vmax.f32 %v1175_v51, 0.0 }
 0x3b0   :  { %v1247_v54 = vpack.c.bf16 %v1229_v52, %v1228_v47 }
 0x3b1   :  { %v1246_v55 = vpack.c.bf16 %v1227_v53, %v1226_v50  ;;  %v2033_v56 = vpop.f32.mrb[72].mxu1 }
 0x3b2   :  { %v1196_v57 = vadd.f32 %v2033_v56, %v2526_v21  ;;  %v1187_v59 = vpop.f32.mrb[73].mxu1 }
 0x3b3   :  { %2063 = vmatprep.mubr.msk.bf16.mxu0 %vm119_vm0, %v1246_v55  ;;  %v1188_v60 = vadd.f32 %v2526_v21, %v1187_v59  ;;  %v2034_v61 = vpop.f32.mrb[74].mxu1 }
 0x3b4   :  { %2064 = vmatmul.mubr.msk.bf16.gmra.mrb[76].mxu0 %vm119_vm0, %v1247_v54  ;;  %v1232_v62 = vmax.f32 %v1196_v57, 0.0  ;;  %v1199_v63 = vadd.f32 %v2034_v61, %v2526_v21  ;;  %v1190_v0 = vpop.f32.mrb[75].mxu1 }
 0x3b5   :  { %v1230_v1 = vmax.f32 %v1188_v60, 0.0  ;;  %v1191_v2 = vadd.f32 %v2526_v21, %v1190_v0  ;;  %v2586_v21 = vld [vmem:[%s2684_s10] ss:$0 sm:$0xff]  ;;  %s2127_s10 = smov [#allocation3]  }
 0x3b6   :  { %v1233_v3 = vmax.f32 %v1199_v63, 0.0  ;;  %s1663_s11 = sshll.u32 %s2127_s10, 4  ;;  %s1664_s11 = int_to_ptr.vmem [resolvable:$true] %s1663_s11 }
 0x3b7   :  { %v1231_v4 = vmax.f32 %v1191_v2, 0.0  ;;  %s2101_s27 = scalar_lea.vmem %s1664_s11, 32  ;;  %p2106_p1 = scmp.lt.s32.totalorder %s1664_s11, %s1664_s11 }
 0x3b8   :  { %v1249_v5 = vpack.c.bf16 %v1233_v3, %v1232_v62  ;;  %p2102_p0 = scmp.ne.s32.totalorder %s1664_s11, %s2101_s27  ;;  %p2107_p2 = scmp.lt.s32.totalorder %s2101_s27, %s2101_s27 }
 0x3b9   :  { %v1248_v6 = vpack.c.bf16 %v1231_v4, %v1230_v1 }
 0x3ba   :  { %p2108_p3 = por %p2107_p2, %p2106_p1 }
 0x3bb   :  { %2067 = vmatprep.mubr.msk.bf16.mxu0 %vm119_vm0, %v1248_v6 }
 0x3bc   :  { %2068 = vmatmul.mubr.msk.bf16.gmra.mrb[80].mxu0 %vm119_vm0, %v1249_v5  ;;  %p2109_p4 = pnand %p2108_p3, %p2102_p0 }
 0x457   :  { %v2041_v10 = vpop.f32.mrb[52].mxu0 }
 0x458   :  { %v1364_v11 = vadd.f32 %v2041_v10, %v2586_v21  ;;  %v1355_v12 = vpop.f32.mrb[53].mxu0 }
 0x459   :  { %v1356_v13 = vadd.f32 %v2586_v21, %v1355_v12  ;;  %v2042_v14 = vpop.f32.mrb[54].mxu0 }
 0x45a   :  { %v1367_v15 = vadd.f32 %v2042_v14, %v2586_v21  ;;  %v1358_v16 = vpop.f32.mrb[55].mxu0  ;;  %v1484_v18 = vmax.f32 %v1364_v11, 0.0 }
 0x45b   :  { %v1359_v17 = vadd.f32 %v2586_v21, %v1358_v16  ;;  %v1482_v20 = vmax.f32 %v1356_v13, 0.0 }
 0x45c   :  { %v1485_v19 = vmax.f32 %v1367_v15, 0.0 }
 0x45d   :  { %v1483_v22 = vmax.f32 %v1359_v17, 0.0 }
 0x45e   :  { %v2592_v23 = vpack.c.bf16 %v1485_v19, %v1484_v18 }
 0x45f   :  { %v2594_v24 = vpack.c.bf16 %v1483_v22, %v1482_v20  ;;  %v2045_v25 = vpop.f32.mrb[56].mxu0 }
 0x460   :  { %v1380_v46 = vadd.f32 %v2045_v25, %v2586_v21  ;;  %v1371_v27 = vpop.f32.mrb[57].mxu0 }
 0x461   :  { %v1372_v28 = vadd.f32 %v2586_v21, %v1371_v27  ;;  %v2046_v30 = vpop.f32.mrb[58].mxu0 }
 0x462   :  { %v1383_v31 = vadd.f32 %v2046_v30, %v2586_v21  ;;  %v1374_v32 = vpop.f32.mrb[59].mxu0  ;;  %v1488_v34 = vmax.f32 %v1380_v46, 0.0  ;;  %v1546_v46 = vsel %vm1541_vm2, %v2594_v24, 0 }
 0x463   :  { %v1375_v33 = vadd.f32 %v2586_v21, %v1374_v32  ;;  %v1486_v36 = vmax.f32 %v1372_v28, 0.0 }
 0x464   :  { %v1489_v35 = vmax.f32 %v1383_v31, 0.0 }
 0x465   :  { %v1487_v37 = vmax.f32 %v1375_v33, 0.0 }
 0x466   :  { %v2600_v38 = vpack.c.bf16 %v1489_v35, %v1488_v34 }
 0x467   :  { %v2602_v39 = vpack.c.bf16 %v1487_v37, %v1486_v36  ;;  %v2049_v40 = vpop.f32.mrb[60].mxu0 }
 0x468   :  { %v1396_v41 = vadd.f32 %v2049_v40, %v2586_v21  ;;  %v1387_v42 = vpop.f32.mrb[61].mxu0 }
 0x469   :  { %v1388_v43 = vadd.f32 %v2586_v21, %v1387_v42  ;;  %v2050_v44 = vpop.f32.mrb[62].mxu0 }
 0x46a   :  { %v1399_v45 = vadd.f32 %v2050_v44, %v2586_v21  ;;  %v1390_v58 = vpop.f32.mrb[63].mxu0  ;;  %v1492_v26 = vmax.f32 %v1396_v41, 0.0 }
 0x46b   :  { %v1391_v29 = vadd.f32 %v2586_v21, %v1390_v58  ;;  %v1490_v48 = vmax.f32 %v1388_v43, 0.0  ;;  %v1549_v43 = vsel %vm1541_vm2, %v2592_v23, 0  ;;  %v1552_v23 = vsel %vm1541_vm2, %v2602_v39, 0 }
 0x46c   :  { %v1493_v47 = vmax.f32 %v1399_v45, 0.0  ;;  %v1555_v39 = vsel %vm1541_vm2, %v2600_v38, 0 }
 0x46d   :  { %v1491_v49 = vmax.f32 %v1391_v29, 0.0 }
 0x46e   :  { %v2608_v50 = vpack.c.bf16 %v1493_v47, %v1492_v26 }
 0x46f   :  { %v2610_v51 = vpack.c.bf16 %v1491_v49, %v1490_v48  ;;  %v2053_v52 = vpop.f32.mrb[64].mxu0 }
 0x470   :  { %v1412_v53 = vadd.f32 %v2053_v52, %v2586_v21  ;;  %v1403_v54 = vpop.f32.mrb[65].mxu0 }
 0x471   :  { %v1404_v55 = vadd.f32 %v2586_v21, %v1403_v54  ;;  %v2054_v56 = vpop.f32.mrb[66].mxu0 }
 0x472   :  { %v1415_v57 = vadd.f32 %v2054_v56, %v2586_v21  ;;  %v1406_v59 = vpop.f32.mrb[67].mxu0  ;;  %v1496_v61 = vmax.f32 %v1412_v53, 0.0 }
 0x473   :  { %v1407_v60 = vadd.f32 %v2586_v21, %v1406_v59  ;;  %v1494_v63 = vmax.f32 %v1404_v55, 0.0 }
 0x474   :  { %v1497_v62 = vmax.f32 %v1415_v57, 0.0 }
 0x475   :  { %v1495_v0 = vmax.f32 %v1407_v60, 0.0 }
 0x476   :  { %v2616_v1 = vpack.c.bf16 %v1497_v62, %v1496_v61 }
 0x477   :  { %v2618_v2 = vpack.c.bf16 %v1495_v0, %v1494_v63  ;;  %v2057_v3 = vpop.f32.mrb[68].mxu0 }
 0x478   :  { %v1428_v4 = vadd.f32 %v2057_v3, %v2586_v21  ;;  %v1419_v5 = vpop.f32.mrb[69].mxu0  ;;  %v1567_v38 = vsel %vm1541_vm2, %v2616_v1, 0 }
 0x479   :  { %v1420_v6 = vadd.f32 %v2586_v21, %v1419_v5  ;;  %v2058_v8 = vpop.f32.mrb[70].mxu0 }
 0x47a   :  { %v1431_v9 = vadd.f32 %v2058_v8, %v2586_v21  ;;  %v1422_v10 = vpop.f32.mrb[71].mxu0  ;;  %v1500_v12 = vmax.f32 %v1428_v4, 0.0  ;;  %v1561_v8 = vsel %vm1541_vm2, %v2608_v50, 0  ;;  %v1535_v50 = vpop.permute.xlu0 %1534 }
 0x47b   :  { %v1423_v11 = vadd.f32 %v2586_v21, %v1422_v10  ;;  %v1498_v14 = vmax.f32 %v1420_v6, 0.0  ;;  %v1558_v6 = vsel %vm1541_vm2, %v2610_v51, 0  ;;  %v1537_v51 = vlaneseq }
 0x47c   :  { %v1501_v13 = vmax.f32 %v1431_v9, 0.0 }
 0x47d   :  { %v1499_v15 = vmax.f32 %v1423_v11, 0.0  ;;  %v1538_v9 = vshrl.u32 %v1537_v51, 7  ;;  %v2126_v11 = vmov 1966171168   ;;  %vm1654_vm3 = vcmp.lt.s32.totalorder %v1537_v51, 256 }
 0x47e   :  { %v1523_v16 = vpack.c.bf16 %v1501_v13, %v1500_v12  ;;  %v1638_v12 = vunpack.c.l.s4 %v2126_v11 }
 0x47f   :  { %v1522_v17 = vpack.c.bf16 %v1499_v15, %v1498_v14  ;;  %v2061_v18 = vpop.f32.mrb[72].mxu0  ;;  %v1539_v10 = vsub.s32 0, %v1538_v9 }
 0x480   :  { %v1444_v19 = vadd.f32 %v2061_v18, %v2586_v21  ;;  %v1435_v20 = vpop.f32.mrb[73].mxu0  ;;  %v1639_v14 = vunpack.c.0.s8 %v1638_v12 }
 0x481   :  { %v1436_v22 = vadd.f32 %v2586_v21, %v1435_v20  ;;  %v2062_v25 = vpop.f32.mrb[74].mxu0  ;;  %2075 = vmatprep.subr.msk.bf16.mxu1 %vm1541_vm2, %v1522_v17  ;;  %v1540_v13 = vrot.slane %v1535_v50, %v1539_v10 }
 0x482   :  { %v1447_v27 = vadd.f32 %v2062_v25, %v2586_v21  ;;  %v1438_v28 = vpop.f32.mrb[75].mxu0  ;;  %1866 = vmatpush3.bf16.xpose.msra.mxu1 %v1546_v46  ;;  %v1504_v31 = vmax.f32 %v1444_v19, 0.0  ;;  %v1642_v18 = vsub.s32 %v1639_v14, %v1538_v9 }
 0x483   :  { %v1439_v30 = vadd.f32 %v2586_v21, %v1438_v28  ;;  %2076 = vmatprep.subr.msk.bf16.mxu1 %vm1541_vm2, %v1523_v16  ;;  %v1502_v33 = vmax.f32 %v1436_v22, 0.0 }
 0x484   :  { %v1505_v32 = vmax.f32 %v1447_v27, 0.0 }
 0x485   :  { %v1503_v34 = vmax.f32 %v1439_v30, 0.0 }
 0x486   :  { %v1525_v35 = vpack.c.bf16 %v1505_v32, %v1504_v31 }
 0x487   :  { %v1524_v36 = vpack.c.bf16 %v1503_v34, %v1502_v33  ;;  %v2065_v37 = vpop.f32.mrb[76].mxu0 }
 0x488   :  { %v1460_v40 = vadd.f32 %v2065_v37, %v2586_v21  ;;  %v1451_v41 = vpop.f32.mrb[77].mxu0 }
 0x489   :  { %v1452_v24 = vadd.f32 %v2586_v21, %v1451_v41  ;;  %v2066_v42 = vpop.f32.mrb[78].mxu0 }
 0x48a   :  { %v1463_v44 = vadd.f32 %v2066_v42, %v2586_v21  ;;  %v1454_v45 = vpop.f32.mrb[79].mxu0  ;;  %1868 = vmatpush3.bf16.xpose.msra.mxu1 %v1549_v43  ;;  %v1508_v29 = vmax.f32 %v1460_v40, 0.0 }
 0x48b   :  { %v1455_v58 = vadd.f32 %v2586_v21, %v1454_v45  ;;  %2077 = vmatprep.subr.msk.bf16.mxu1 %vm1541_vm2, %v1524_v36  ;;  %v1506_v47 = vmax.f32 %v1452_v24, 0.0 }
 0x48c   :  { %v1509_v26 = vmax.f32 %v1463_v44, 0.0 }
 0x48d   :  { %v1507_v48 = vmax.f32 %v1455_v58, 0.0 }
 0x48e   :  { %v1527_v49 = vpack.c.bf16 %v1509_v26, %v1508_v29 }
 0x48f   :  { %v1526_v52 = vpack.c.bf16 %v1507_v48, %v1506_v47  ;;  %v2069_v53 = vpop.f32.mrb[80].mxu0 }
 0x490   :  { %v1476_v54 = vadd.f32 %v2069_v53, %v2586_v21  ;;  %v1467_v55 = vpop.f32.mrb[81].mxu0 }
 0x491   :  { %v1468_v56 = vadd.f32 %v2586_v21, %v1467_v55  ;;  %v2070_v57 = vpop.f32.mrb[82].mxu0 }
 0x492   :  { %1870 = vmatpush3.bf16.xpose.msra.mxu1 %v1552_v23  ;;  %v1512_v59 = vmax.f32 %v1476_v54, 0.0  ;;  %v1479_v60 = vadd.f32 %v2070_v57, %v2586_v21  ;;  %v1470_v61 = vpop.f32.mrb[83].mxu0 }
 0x493   :  { %2078 = vmatprep.subr.msk.bf16.mxu1 %vm1541_vm2, %v1525_v35  ;;  %v1510_v62 = vmax.f32 %v1468_v56, 0.0  ;;  %v1471_v63 = vadd.f32 %v2586_v21, %v1470_v61  ;;  %v1564_v21 = vsel %vm1541_vm2, %v2618_v2, 0 }
 0x494   :  { %v1513_v0 = vmax.f32 %v1479_v60, 0.0 }
 0x495   :  { %v1511_v3 = vmax.f32 %v1471_v63, 0.0 }
 0x496   :  { %v1529_v4 = vpack.c.bf16 %v1513_v0, %v1512_v59 }
 0x497   :  { %v1528_v5 = vpack.c.bf16 %v1511_v3, %v1510_v62 }
 0x49a   :  { %1872 = vmatpush3.bf16.xpose.msra.mxu1 %v1555_v39 }
 0x49b   :  { %2079 = vmatprep.subr.msk.bf16.mxu1 %vm1541_vm2, %v1526_v52 }
 0x4a2   :  { %1874 = vmatpush3.bf16.xpose.msra.mxu1 %v1558_v6 }
 0x4a3   :  { %2080 = vmatprep.subr.msk.bf16.mxu1 %vm1541_vm2, %v1527_v49 }
 0x4aa   :  { %1876 = vmatpush3.bf16.xpose.msra.mxu1 %v1561_v8 }
 0x4ab   :  { %2081 = vmatprep.subr.msk.bf16.mxu1 %vm1541_vm2, %v1528_v5 }
 0x4b2   :  { %1878 = vmatpush3.bf16.xpose.msra.mxu1 %v1564_v21 }
 0x4b3   :  { %2082 = vmatprep.subr.msk.bf16.mxu1 %vm1541_vm2, %v1529_v4 }
 0x4ba   :  { %1880 = vmatpush3.bf16.xpose.msra.mxu1 %v1567_v38 }
 0x4c1   :  { %1882 = vmatmul.mubr.msk.bf16.vlgmr.msra.gmra.mrb[76].mxu1 %vm1541_vm2, %v2579_v7 }
 0x594   :  { %v1627_v15 = vpop.f32.mrb[76].mxu1 }
 0x595   :  { %v1628_v2 = vadd.f32 %v1627_v15, %v1540_v13  ;;  %v1629_v16 = vpop.f32.mrb[77].mxu1 }
 0x596   :  { %v1630_v17 = vadd.f32 %v1629_v16, %v1540_v13  ;;  %v1631_v19 = vpop.f32.mrb[78].mxu1 }
 0x597   :  { %v1632_v20 = vpop.f32.mrb[79].mxu1 }
 0x598   :  { %v1636_v1 = vcombine.low %v1628_v2, %v1630_v17 }
 0x59a   :  { %v1643_v22 = vrot.slane %v1636_v1, %v1642_v18 }
 0x59c   :  { %v1650_v7 = vrot.slane %v1643_v22, %v1642_v18 }
 0x59e   :  { %1656 = vst.msk [vmem:[#allocation3] sm:$0x3] %vm1654_vm3, %v1650_v7 }
 0x59f   :  { %2112 = shalt.err (!%p2109_p4)
}
 0x5a0   :  { %s2113_s30 = scalar_lea.hbm %s2687_s13, 32 }
 0x5a1   :  { %p2114_p5 = scmp.ne.s32.totalorder %s2687_s13, %s2113_s30  ;;  %p2117_p6 = scmp.lt.u32.totalorder %s2113_s30, %s2687_s13 }
 0x5a3   :  { %p2119_p7 = pnand %p2117_p6, %p2114_p5 }
 0x5a5   :  { %2122 = shalt.err (!%p2119_p7)
}
 0x5a6   :  { %1666 = dma.vmem_to_hbm [thread:$0]  %s1664_s11, 32, %s2687_s13, [#allocation4]  }
 0x5a7   :  { %2123 = dma.done.wait [#allocation4], 32  }
 0x5a8   :  { %2124 = vsyncadd [#allocation4], 4294967264 }
 0x5a9   :  { %1670 = vsyncpa [#allocation4], 1 }

</bundles_post_ra>
